<compile_context>
chip_gen: v5e
topology: v5e:2x2
jax: 0.10.0
libtpu: 0.0.40
codegen_flags: <defaults>
</compile_context>

<pallas_src>
import numpy as np
import jax
import jax.numpy as jnp
from jax.experimental import pallas as pl
from jax.experimental.pallas import tpu as pltpu


def rup(x, m):
    return ((x + m - 1) // m) * m


# ---------------------------------------------------------------------------
# Fused chain kernel: ONE invocation, fully unrolled over the layer chain
# ---------------------------------------------------------------------------

def make_chain_kernel(Lc, nsel, sizes, offs, Hq, Ee, No_p):
    def kernel(idx_ref, state_ref,                          # SMEM idxs, VMEM state row
               wgh_ref, wge_ref, bg_ref, wbe_ref, bb_ref,   # LSTM gate slabs
               w1f_ref, w1b_ref, b1_ref, w2_ref, b2_ref,    # linear / logits slabs
               logp_ref, value_ref):                        # outputs
        lane_e = jax.lax.broadcasted_iota(jnp.int32, (1, Ee), 1)
        lane_o = jax.lax.broadcasted_iota(jnp.int32, (1, No_p), 1)

        def lstm_fwd(l, x_h, x_e):
            # seq_len == 1 and c0 == 0  =>  c = i * g  (f-gate dead, not stored)
            gs = []
            for k in range(3):                               # gate order: i, g, o
                g = jnp.dot(x_e, wge_ref[l, k],
                            preferred_element_type=jnp.float32) + bg_ref[l, k]
                if x_h is not None:
                    g = g + jnp.dot(x_h, wgh_ref[l, k],
                                    preferred_element_type=jnp.float32)
                gs.append(g)
            return jax.nn.sigmoid(gs[2]) * jnp.tanh(
                jax.nn.sigmoid(gs[0]) * jnp.tanh(gs[1]))

        def lstm_bwd(x_e):                                   # layer 0 only, extras only
            gs = [jnp.dot(x_e, wbe_ref[k],
                          preferred_element_type=jnp.float32) + bb_ref[k]
                  for k in range(3)]
            return jax.nn.sigmoid(gs[2]) * jnp.tanh(
                jax.nn.sigmoid(gs[0]) * jnp.tanh(gs[1]))

        ex = jnp.zeros((1, Ee), jnp.float32)    # cumulative one-hots (layers >= 1)
        hid = None
        for l in range(Lc):
            x_e = (state_ref[...] if l == 0 else ex).astype(jnp.bfloat16)
            x_h = None if l == 0 else hid.astype(jnp.bfloat16)

            h_f = lstm_fwd(l, x_h, x_e)
            pre1 = jnp.dot(h_f.astype(jnp.bfloat16), w1f_ref[l],
                           preferred_element_type=jnp.float32) + b1_ref[l]
            if l == 0:
                # only the visualisation layer is bidirectional
                h_b = lstm_bwd(x_e)
                pre1 = pre1 + jnp.dot(h_b.astype(jnp.bfloat16), w1b_ref[...],
                                      preferred_element_type=jnp.float32)

            if l == Lc - 1:
                # critic layer: Linear(H,1) folded into column 0 of w1f[l]
                value_ref[...] = pre1
            else:
                hid = jnp.maximum(pre1, 0.0)
                logits = jnp.dot(hid.astype(jnp.bfloat16), w2_ref[l],
                                 preferred_element_type=jnp.float32) + b2_ref[l]
                n_out = sizes[l]                              # static per path
                valid = lane_o < n_out
                masked = jnp.where(valid, logits, jnp.full_like(logits, -1e30))
                m = jnp.max(masked, axis=-1, keepdims=True)
                e = jnp.where(valid, jnp.exp(masked - m), 0.0)
                lse = jnp.log(jnp.sum(e, axis=-1, keepdims=True))
                logp_ref[l] = masked - m - lse                # masked log-softmax row
                # append this selection's one-hot for the following layers
                tgt = offs[l] + idx_ref[l]
                ex = ex + (lane_e == tgt).astype(jnp.float32)

    return kernel


# ---------------------------------------------------------------------------
# Deterministic parameter init + packing (numpy glue; weight matrices end up bf16)
# ---------------------------------------------------------------------------

class KeyGen:
    def __init__(self, key):
        self.key = key

    def __call__(self):
        self.key, sub = jax.random.split(self.key)
        return sub


def _rand(kg, shape, scale=0.1):
    return np.asarray(jax.random.normal(kg(), shape, dtype=jnp.float32)) * scale


def pack_ff(kg, H, Hq, Ee, No_p, extras_len, n_out, bidirectional, hidden_in):
    """FeedForwardLayer: LSTM cell (i,g,o gates only) -> Linear+ReLU -> Linear(+softmax)."""
    assert extras_len <= Ee and H <= Hq and n_out <= No_p
    assert not (bidirectional and hidden_in)   # only the (hidden-less) vis layer is bidir

    wgh = np.zeros((3, Hq, Hq), np.float32)    # hidden  -> gates (forward dir)
    wge = np.zeros((3, Ee, Hq), np.float32)    # extras  -> gates (forward dir)
    bg = np.zeros((3, 1, Hq), np.float32)
    lstm_in = (H if hidden_in else 0) + extras_len
    for k in range(3):                          # gates i, g, o
        Wg = _rand(kg, (H, lstm_in))
        bgk = _rand(kg, (H,)) + _rand(kg, (H,))             # b_ih + b_hh
        r = 0
        if hidden_in:
            wgh[k, :H, :H] = Wg[:, :H].T
            r = H
        wge[k, :extras_len, :H] = Wg[:, r:r + extras_len].T
        bg[k, 0, :H] = bgk

    wbe = bb = w1b = None
    if bidirectional:
        wbe = np.zeros((3, Ee, Hq), np.float32)
        bb = np.zeros((3, 1, Hq), np.float32)
        for k in range(3):
            Wg = _rand(kg, (H, extras_len))
            bgk = _rand(kg, (H,)) + _rand(kg, (H,))
            wbe[k, :extras_len, :H] = Wg.T
            bb[k, 0, :H] = bgk

    emb = 2 * H if bidirectional else H
    W1 = _rand(kg, (H, emb))
    w1f = np.zeros((Hq, Hq), np.float32)
    w1f[:H, :H] = W1[:, :H].T
    if bidirectional:
        w1b = np.zeros((Hq, Hq), np.float32)
        w1b[:H, :H] = W1[:, H:2 * H].T
    b1 = np.zeros((1, Hq), np.float32)
    b1[0, :H] = _rand(kg, (H,))

    W2 = _rand(kg, (n_out, H))
    w2 = np.zeros((Hq, No_p), np.float32)
    w2[:H, :n_out] = W2.T
    b2 = np.zeros((1, No_p), np.float32)
    b2[0, :n_out] = _rand(kg, (n_out,))
    return dict(wgh=wgh, wge=wge, bg=bg, wbe=wbe, bb=bb,
                w1f=w1f, w1b=w1b, b1=b1, w2=w2, b2=b2)


def pack_critic(kg, H, Hq, Ee, extras_len):
    """CriticLayer: LSTM cell -> Linear(H, 1); the Linear lives in column 0 of w1f."""
    assert extras_len <= Ee
    wgh = np.zeros((3, Hq, Hq), np.float32)
    wge = np.zeros((3, Ee, Hq), np.float32)
    bg = np.zeros((3, 1, Hq), np.float32)
    for k in range(3):
        Wg = _rand(kg, (H, H + extras_len))
        bgk = _rand(kg, (H,)) + _rand(kg, (H,))
        wgh[k, :H, :H] = Wg[:, :H].T
        wge[k, :extras_len, :H] = Wg[:, H:H + extras_len].T
        bg[k, 0, :H] = bgk
    w1f = np.zeros((Hq, Hq), np.float32)
    w1f[:H, 0] = _rand(kg, (1, H))[0]
    b1 = np.zeros((1, Hq), np.float32)
    b1[0, 0] = _rand(kg, (1,))[0]
    return dict(wgh=wgh, wge=wge, bg=bg, w1f=w1f, b1=b1)


def _stack_path(layers, vis, nsel):
    bf16 = lambda a: jnp.asarray(a, jnp.bfloat16)
    f32 = lambda a: jnp.asarray(a, jnp.float32)
    return {
        'wgh': bf16(np.stack([L['wgh'] for L in layers])),
        'wge': bf16(np.stack([L['wge'] for L in layers])),
        'bg':  f32(np.stack([L['bg'] for L in layers])),
        'wbe': bf16(vis['wbe']),
        'bb':  f32(vis['bb']),
        'w1f': bf16(np.stack([L['w1f'] for L in layers])),
        'w1b': bf16(vis['w1b']),
        'b1':  f32(np.stack([L['b1'] for L in layers])),
        'w2':  bf16(np.stack([L['w2'] for L in layers[:nsel]])),
        'b2':  f32(np.stack([L['b2'] for L in layers[:nsel]])),
    }


# ---------------------------------------------------------------------------
# AgentNetwork (forward_emulate only)
# ---------------------------------------------------------------------------

class AgentNetworkPallas:
    def __init__(self, key, num_inputs, num_hidden, num_actions, num_visualisations,
                 list_of_param_lists):
        kg = KeyGen(key)
        H = num_hidden
        psizes = [[p['Values'] for p in plist] for plist in list_of_param_lists]
        self.num_inputs = num_inputs
        self.num_visualisations = num_visualisations
        self.num_actions = num_actions
        self.H = H
        self.Hq = rup(H, 16)                                  # bf16 sublane pack unit
        max_extras = max([num_inputs] +
                         [num_visualisations + num_actions + sum(ps) for ps in psizes])
        self.Ee = rup(max_extras, 16)
        self.No_p = rup(max([num_visualisations, num_actions] +
                            [max(ps) if ps else 1 for ps in psizes]), 128)

        # shared layers (same weights reused on every action path)
        vis = pack_ff(kg, H, self.Hq, self.Ee, self.No_p,
                      extras_len=num_inputs, n_out=num_visualisations,
                      bidirectional=True, hidden_in=False)
        act = pack_ff(kg, H, self.Hq, self.Ee, self.No_p,
                      extras_len=num_visualisations, n_out=num_actions,
                      bidirectional=False, hidden_in=True)

        self._packed, self._meta, self._fwd = [], [], []
        for ps in psizes:
            layers = [vis, act]
            sizes = [num_visualisations, num_actions]
            offs = [0, num_visualisations]
            extras_len = num_visualisations + num_actions
            for psz in ps:
                layers.append(pack_ff(kg, H, self.Hq, self.Ee, self.No_p,
                                      extras_len=extras_len, n_out=psz,
                                      bidirectional=False, hidden_in=True))
                sizes.append(psz)
                offs.append(extras_len)
                extras_len += psz
            layers.append(pack_critic(kg, H, self.Hq, self.Ee, extras_len))
            nsel = len(sizes)
            meta = dict(Lc=len(layers), sizes=sizes, offs=offs)
            self._packed.append(_stack_path(layers, vis, nsel))
            self._meta.append(meta)
            self._fwd.append(self._build_forward(meta))

    def _build_forward(self, meta):
        Hq, Ee, No_p = self.Hq, self.Ee, self.No_p
        Lc, sizes, offs = meta['Lc'], meta['sizes'], meta['offs']
        nsel = len(sizes)
        n_in = self.num_inputs

        vmem = pl.BlockSpec(memory_space=pltpu.MemorySpace.VMEM)
        smem = pl.BlockSpec(memory_space=pltpu.MemorySpace.SMEM)

        fused = pl.pallas_call(
            make_chain_kernel(Lc, nsel, sizes, offs, Hq, Ee, No_p),
            out_shape=(jax.ShapeDtypeStruct((nsel, 1, No_p), jnp.float32),
                       jax.ShapeDtypeStruct((1, Hq), jnp.float32)),
            in_specs=[smem, vmem] + [vmem] * 10,
            out_specs=(vmem, vmem),
        )

        def fwd(params, state, idxs):
            state_row = jnp.zeros((1, Ee), jnp.float32)
            state_row = state_row.at[0, :n_in].set(state.astype(jnp.float32))
            logp, pre1 = fused(idxs, state_row,
                               params['wgh'], params['wge'], params['bg'],
                               params['wbe'], params['bb'],
                               params['w1f'], params['w1b'], params['b1'],
                               params['w2'], params['b2'])
            rows = logp[:, 0, :]
            lp = jnp.take_along_axis(rows, idxs[:, None], axis=1)[:, 0]
            return lp, pre1[0, 0]

        return jax.jit(fwd)

    def forward_emulate(self, state, action_values):
        # action_values are static ints from the recorded trajectory; the chosen action
        # selects which fused (resident-weight) pallas_call to run, mirroring the
        # PyTorch data-dependent ModuleList indexing.
        action = int(action_values[1])
        idxs = jnp.asarray(np.asarray(action_values, dtype=np.int32))
        lp, value = self._fwd[action](self._packed[action], state, idxs)
        sampled_values = [int(v) for v in action_values]
        log_probs = [lp[k] for k in range(lp.shape[0])]
        return sampled_values, log_probs, value


# ---------------------------------------------------------------------------
# Plain-JAX reference (same packed weights / same math) for correctness checking
# ---------------------------------------------------------------------------

def reference_forward(net, state, action_values):
    action = int(action_values[1])
    params, meta = net._packed[action], net._meta[action]
    Lc, sizes, offs = meta['Lc'], meta['sizes'], meta['offs']
    nsel = len(sizes)
    Ee, No_p = net.Ee, net.No_p

    bf = lambda a: jnp.asarray(a, jnp.float32).astype(jnp.bfloat16).astype(jnp.float32)
    f32 = lambda a: jnp.asarray(a).astype(jnp.float32)
    wgh, wge, bg = f32(params['wgh']), f32(params['wge']), f32(params['bg'])
    wbe, bb = f32(params['wbe']), f32(params['bb'])
    w1f, w1b, b1 = f32(params['w1f']), f32(params['w1b']), f32(params['b1'])
    w2, b2 = f32(params['w2']), f32(params['b2'])

    def lstm(x_h, x_e, wh, we, b):
        gs = []
        for k in range(3):
            g = x_e @ we[k] + b[k]
            if x_h is not None:
                g = g + x_h @ wh[k]
            gs.append(g)
        return jax.nn.sigmoid(gs[2]) * jnp.tanh(
            jax.nn.sigmoid(gs[0]) * jnp.tanh(gs[1]))

    state_row = jnp.zeros((1, Ee), jnp.float32)
    state_row = state_row.at[0, :net.num_inputs].set(jnp.asarray(state, jnp.float32))
    ex = jnp.zeros((1, Ee), jnp.float32)
    hid, value, logps = None, None, []
    for l in range(Lc):
        x_e = bf(state_row if l == 0 else ex)
        x_h = None if l == 0 else bf(hid)
        h_f = lstm(x_h, x_e, wgh[l], wge[l], bg[l])
        pre1 = bf(h_f) @ w1f[l] + b1[l]
        if l == 0:
            h_b = lstm(None, x_e, None, wbe, bb)
            pre1 = pre1 + bf(h_b) @ w1b
        if l == Lc - 1:
            value = pre1[0, 0]
        else:
            hid = jnp.maximum(pre1, 0.0)
            logits = bf(hid) @ w2[l] + b2[l]
            n_out = sizes[l]
            valid = jnp.arange(No_p) < n_out
            masked = jnp.where(valid, logits[0], -1e30)
            m = jnp.max(masked)
            lse = jnp.log(jnp.sum(jnp.where(valid, jnp.exp(masked - m), 0.0)))
            logps.append(masked[int(action_values[l])] - m - lse)
            ex = ex.at[0, offs[l] + int(action_values[l])].add(1.0)
    return logps, value


if __name__ == "__main__":
    key = jax.random.PRNGKey(0)
    num_inputs, num_hidden, num_visualisations = 8, 16, 4
    list_of_param_lists = [
        [{'Values': 3, 'Type': 'categorical'}, {'Values': 2, 'Type': 'categorical'}],
        [{'Values': 4, 'Type': 'categorical'}],
        [{'Values': 2, 'Type': 'categorical'}, {'Values': 3, 'Type': 'categorical'}],
    ]
    num_actions = len(list_of_param_lists)

    k_state, k_params = jax.random.split(key)
    state = jax.random.normal(k_state, (num_inputs,), dtype=jnp.float32)

    net = AgentNetworkPallas(k_params, num_inputs, num_hidden, num_actions,
                             num_visualisations, list_of_param_lists)

    # vis=1, action=2, then parameter values for action 2's two param layers (sizes 2, 3)
    action_values = [1, 2, 1, 0]

    sampled_values, log_probs, critic_value = net.forward_emulate(state, action_values)
    log_probs = [jax.block_until_ready(lp) for lp in log_probs]
    critic_value = jax.block_until_ready(critic_value)

    ref_logps, ref_value = reference_forward(net, state, action_values)
    for lp, rlp in zip(log_probs, ref_logps):
        np.testing.assert_allclose(np.asarray(lp), np.asarray(rlp), rtol=1e-3, atol=1e-3)
    np.testing.assert_allclose(np.asarray(critic_value), np.asarray(ref_value),
                               rtol=1e-3, atol=1e-3)
    assert all(bool(jnp.isfinite(lp)) for lp in log_probs)
    assert bool(jnp.isfinite(critic_value))
    print("KERNEL_OK")
</pallas_src>

<mosaic_0001>
module attributes {stable_mosaic.version = 11 : i64} {
  func.func @kernel(%arg0: memref<4xi32, #tpu.memory_space<smem>>, %arg1: memref<1x16xf32, #tpu.memory_space<vmem>>, %arg2: memref<5x3x16x16xbf16, #tpu.memory_space<vmem>>, %arg3: memref<5x3x16x16xbf16, #tpu.memory_space<vmem>>, %arg4: memref<5x3x1x16xf32, #tpu.memory_space<vmem>>, %arg5: memref<3x16x16xbf16, #tpu.memory_space<vmem>>, %arg6: memref<3x1x16xf32, #tpu.memory_space<vmem>>, %arg7: memref<5x16x16xbf16, #tpu.memory_space<vmem>>, %arg8: memref<16x16xbf16, #tpu.memory_space<vmem>>, %arg9: memref<5x1x16xf32, #tpu.memory_space<vmem>>, %arg10: memref<4x16x128xbf16, #tpu.memory_space<vmem>>, %arg11: memref<4x1x128xf32, #tpu.memory_space<vmem>>, %arg12: memref<4x1x128xf32, #tpu.memory_space<vmem>>, %arg13: memref<1x16xf32, #tpu.memory_space<vmem>>) attributes {dimension_semantics = [], scalar_prefetch = 0 : i64, scratch_operands = 0 : i64, tpu.core_type = #tpu.core_type<tc>} {
    %0 = tpu.iota {dimensions = array<i32: 1>} : vector<1x16xi32>
    %1 = tpu.iota {dimensions = array<i32: 1>} : vector<1x128xi32>
    %cst = arith.constant 0.000000e+00 : f32
    %2 = vector.broadcast %cst : f32 to vector<1x16xf32>
    %c0 = arith.constant 0 : index
    %c0_0 = arith.constant 0 : index
    %3 = vector.load %arg1[%c0, %c0_0] : memref<1x16xf32, #tpu.memory_space<vmem>>, vector<1x16xf32>
    %4 = arith.truncf %3 : vector<1x16xf32> to vector<1x16xbf16>
    %c0_1 = arith.constant 0 : index
    %c0_2 = arith.constant 0 : index
    %c0_3 = arith.constant 0 : index
    %c0_4 = arith.constant 0 : index
    %5 = vector.load %arg3[%c0_1, %c0_2, %c0_3, %c0_4] : memref<5x3x16x16xbf16, #tpu.memory_space<vmem>>, vector<1x1x16x16xbf16>
    %6 = vector.shape_cast %5 : vector<1x1x16x16xbf16> to vector<16x16xbf16>
    %cst_5 = arith.constant dense<0.000000e+00> : vector<1x16xf32>
    %7 = tpu.matmul %4, %6, %cst_5 {dimension_numbers = #tpu.dot_dimension_numbers<[1], [0], [0], [1], [0, 0, 1, 1], [], []>} : vector<1x16xbf16>, vector<16x16xbf16>, vector<1x16xf32> -> vector<1x16xf32>
    %c0_6 = arith.constant 0 : index
    %c0_7 = arith.constant 0 : index
    %c0_8 = arith.constant 0 : index
    %c0_9 = arith.constant 0 : index
    %8 = vector.load %arg4[%c0_6, %c0_7, %c0_8, %c0_9] : memref<5x3x1x16xf32, #tpu.memory_space<vmem>>, vector<1x1x1x16xf32>
    %9 = vector.shape_cast %8 : vector<1x1x1x16xf32> to vector<1x16xf32>
    %10 = arith.addf %7, %9 : vector<1x16xf32>
    %c0_10 = arith.constant 0 : index
    %c1 = arith.constant 1 : index
    %c0_11 = arith.constant 0 : index
    %c0_12 = arith.constant 0 : index
    %11 = vector.load %arg3[%c0_10, %c1, %c0_11, %c0_12] : memref<5x3x16x16xbf16, #tpu.memory_space<vmem>>, vector<1x1x16x16xbf16>
    %12 = vector.shape_cast %11 : vector<1x1x16x16xbf16> to vector<16x16xbf16>
    %cst_13 = arith.constant dense<0.000000e+00> : vector<1x16xf32>
    %13 = tpu.matmul %4, %12, %cst_13 {dimension_numbers = #tpu.dot_dimension_numbers<[1], [0], [0], [1], [0, 0, 1, 1], [], []>} : vector<1x16xbf16>, vector<16x16xbf16>, vector<1x16xf32> -> vector<1x16xf32>
    %c0_14 = arith.constant 0 : index
    %c1_15 = arith.constant 1 : index
    %c0_16 = arith.constant 0 : index
    %c0_17 = arith.constant 0 : index
    %14 = vector.load %arg4[%c0_14, %c1_15, %c0_16, %c0_17] : memref<5x3x1x16xf32, #tpu.memory_space<vmem>>, vector<1x1x1x16xf32>
    %15 = vector.shape_cast %14 : vector<1x1x1x16xf32> to vector<1x16xf32>
    %16 = arith.addf %13, %15 : vector<1x16xf32>
    %c0_18 = arith.constant 0 : index
    %c2 = arith.constant 2 : index
    %c0_19 = arith.constant 0 : index
    %c0_20 = arith.constant 0 : index
    %17 = vector.load %arg3[%c0_18, %c2, %c0_19, %c0_20] : memref<5x3x16x16xbf16, #tpu.memory_space<vmem>>, vector<1x1x16x16xbf16>
    %18 = vector.shape_cast %17 : vector<1x1x16x16xbf16> to vector<16x16xbf16>
    %cst_21 = arith.constant dense<0.000000e+00> : vector<1x16xf32>
    %19 = tpu.matmul %4, %18, %cst_21 {dimension_numbers = #tpu.dot_dimension_numbers<[1], [0], [0], [1], [0, 0, 1, 1], [], []>} : vector<1x16xbf16>, vector<16x16xbf16>, vector<1x16xf32> -> vector<1x16xf32>
    %c0_22 = arith.constant 0 : index
    %c2_23 = arith.constant 2 : index
    %c0_24 = arith.constant 0 : index
    %c0_25 = arith.constant 0 : index
    %20 = vector.load %arg4[%c0_22, %c2_23, %c0_24, %c0_25] : memref<5x3x1x16xf32, #tpu.memory_space<vmem>>, vector<1x1x1x16xf32>
    %21 = vector.shape_cast %20 : vector<1x1x1x16xf32> to vector<1x16xf32>
    %22 = arith.addf %19, %21 : vector<1x16xf32>
    %23 = arith.negf %22 : vector<1x16xf32>
    %24 = math.exp %23 : vector<1x16xf32>
    %cst_26 = arith.constant 1.000000e+00 : f32
    %25 = vector.broadcast %cst_26 : f32 to vector<1x16xf32>
    %26 = arith.addf %25, %24 : vector<1x16xf32>
    %27 = arith.divf %25, %26 : vector<1x16xf32>
    %28 = arith.negf %10 : vector<1x16xf32>
    %29 = math.exp %28 : vector<1x16xf32>
    %cst_27 = arith.constant 1.000000e+00 : f32
    %30 = vector.broadcast %cst_27 : f32 to vector<1x16xf32>
    %31 = arith.addf %30, %29 : vector<1x16xf32>
    %32 = arith.divf %30, %31 : vector<1x16xf32>
    %33 = math.tanh %16 : vector<1x16xf32>
    %34 = arith.mulf %32, %33 : vector<1x16xf32>
    %35 = math.tanh %34 : vector<1x16xf32>
    %36 = arith.mulf %27, %35 : vector<1x16xf32>
    %37 = arith.truncf %36 : vector<1x16xf32> to vector<1x16xbf16>
    %c0_28 = arith.constant 0 : index
    %c0_29 = arith.constant 0 : index
    %c0_30 = arith.constant 0 : index
    %38 = vector.load %arg7[%c0_28, %c0_29, %c0_30] : memref<5x16x16xbf16, #tpu.memory_space<vmem>>, vector<1x16x16xbf16>
    %39 = vector.shape_cast %38 : vector<1x16x16xbf16> to vector<16x16xbf16>
    %cst_31 = arith.constant dense<0.000000e+00> : vector<1x16xf32>
    %40 = tpu.matmul %37, %39, %cst_31 {dimension_numbers = #tpu.dot_dimension_numbers<[1], [0], [0], [1], [0, 0, 1, 1], [], []>} : vector<1x16xbf16>, vector<16x16xbf16>, vector<1x16xf32> -> vector<1x16xf32>
    %c0_32 = arith.constant 0 : index
    %c0_33 = arith.constant 0 : index
    %c0_34 = arith.constant 0 : index
    %41 = vector.load %arg9[%c0_32, %c0_33, %c0_34] : memref<5x1x16xf32, #tpu.memory_space<vmem>>, vector<1x1x16xf32>
    %42 = vector.shape_cast %41 : vector<1x1x16xf32> to vector<1x16xf32>
    %43 = arith.addf %40, %42 : vector<1x16xf32>
    %c0_35 = arith.constant 0 : index
    %c0_36 = arith.constant 0 : index
    %c0_37 = arith.constant 0 : index
    %44 = vector.load %arg5[%c0_35, %c0_36, %c0_37] : memref<3x16x16xbf16, #tpu.memory_space<vmem>>, vector<1x16x16xbf16>
    %45 = vector.shape_cast %44 : vector<1x16x16xbf16> to vector<16x16xbf16>
    %cst_38 = arith.constant dense<0.000000e+00> : vector<1x16xf32>
    %46 = tpu.matmul %4, %45, %cst_38 {dimension_numbers = #tpu.dot_dimension_numbers<[1], [0], [0], [1], [0, 0, 1, 1], [], []>} : vector<1x16xbf16>, vector<16x16xbf16>, vector<1x16xf32> -> vector<1x16xf32>
    %c0_39 = arith.constant 0 : index
    %c0_40 = arith.constant 0 : index
    %c0_41 = arith.constant 0 : index
    %47 = vector.load %arg6[%c0_39, %c0_40, %c0_41] : memref<3x1x16xf32, #tpu.memory_space<vmem>>, vector<1x1x16xf32>
    %48 = vector.shape_cast %47 : vector<1x1x16xf32> to vector<1x16xf32>
    %49 = arith.addf %46, %48 : vector<1x16xf32>
    %c1_42 = arith.constant 1 : index
    %c0_43 = arith.constant 0 : index
    %c0_44 = arith.constant 0 : index
    %50 = vector.load %arg5[%c1_42, %c0_43, %c0_44] : memref<3x16x16xbf16, #tpu.memory_space<vmem>>, vector<1x16x16xbf16>
    %51 = vector.shape_cast %50 : vector<1x16x16xbf16> to vector<16x16xbf16>
    %cst_45 = arith.constant dense<0.000000e+00> : vector<1x16xf32>
    %52 = tpu.matmul %4, %51, %cst_45 {dimension_numbers = #tpu.dot_dimension_numbers<[1], [0], [0], [1], [0, 0, 1, 1], [], []>} : vector<1x16xbf16>, vector<16x16xbf16>, vector<1x16xf32> -> vector<1x16xf32>
    %c1_46 = arith.constant 1 : index
    %c0_47 = arith.constant 0 : index
    %c0_48 = arith.constant 0 : index
    %53 = vector.load %arg6[%c1_46, %c0_47, %c0_48] : memref<3x1x16xf32, #tpu.memory_space<vmem>>, vector<1x1x16xf32>
    %54 = vector.shape_cast %53 : vector<1x1x16xf32> to vector<1x16xf32>
    %55 = arith.addf %52, %54 : vector<1x16xf32>
    %c2_49 = arith.constant 2 : index
    %c0_50 = arith.constant 0 : index
    %c0_51 = arith.constant 0 : index
    %56 = vector.load %arg5[%c2_49, %c0_50, %c0_51] : memref<3x16x16xbf16, #tpu.memory_space<vmem>>, vector<1x16x16xbf16>
    %57 = vector.shape_cast %56 : vector<1x16x16xbf16> to vector<16x16xbf16>
    %cst_52 = arith.constant dense<0.000000e+00> : vector<1x16xf32>
    %58 = tpu.matmul %4, %57, %cst_52 {dimension_numbers = #tpu.dot_dimension_numbers<[1], [0], [0], [1], [0, 0, 1, 1], [], []>} : vector<1x16xbf16>, vector<16x16xbf16>, vector<1x16xf32> -> vector<1x16xf32>
    %c2_53 = arith.constant 2 : index
    %c0_54 = arith.constant 0 : index
    %c0_55 = arith.constant 0 : index
    %59 = vector.load %arg6[%c2_53, %c0_54, %c0_55] : memref<3x1x16xf32, #tpu.memory_space<vmem>>, vector<1x1x16xf32>
    %60 = vector.shape_cast %59 : vector<1x1x16xf32> to vector<1x16xf32>
    %61 = arith.addf %58, %60 : vector<1x16xf32>
    %62 = arith.negf %61 : vector<1x16xf32>
    %63 = math.exp %62 : vector<1x16xf32>
    %cst_56 = arith.constant 1.000000e+00 : f32
    %64 = vector.broadcast %cst_56 : f32 to vector<1x16xf32>
    %65 = arith.addf %64, %63 : vector<1x16xf32>
    %66 = arith.divf %64, %65 : vector<1x16xf32>
    %67 = arith.negf %49 : vector<1x16xf32>
    %68 = math.exp %67 : vector<1x16xf32>
    %cst_57 = arith.constant 1.000000e+00 : f32
    %69 = vector.broadcast %cst_57 : f32 to vector<1x16xf32>
    %70 = arith.addf %69, %68 : vector<1x16xf32>
    %71 = arith.divf %69, %70 : vector<1x16xf32>
    %72 = math.tanh %55 : vector<1x16xf32>
    %73 = arith.mulf %71, %72 : vector<1x16xf32>
    %74 = math.tanh %73 : vector<1x16xf32>
    %75 = arith.mulf %66, %74 : vector<1x16xf32>
    %76 = arith.truncf %75 : vector<1x16xf32> to vector<1x16xbf16>
    %c0_58 = arith.constant 0 : index
    %c0_59 = arith.constant 0 : index
    %77 = vector.load %arg8[%c0_58, %c0_59] : memref<16x16xbf16, #tpu.memory_space<vmem>>, vector<16x16xbf16>
    %cst_60 = arith.constant dense<0.000000e+00> : vector<1x16xf32>
    %78 = tpu.matmul %76, %77, %cst_60 {dimension_numbers = #tpu.dot_dimension_numbers<[1], [0], [0], [1], [0, 0, 1, 1], [], []>} : vector<1x16xbf16>, vector<16x16xbf16>, vector<1x16xf32> -> vector<1x16xf32>
    %79 = arith.addf %43, %78 : vector<1x16xf32>
    %cst_61 = arith.constant 0.000000e+00 : f32
    %80 = vector.broadcast %cst_61 : f32 to vector<1x16xf32>
    %81 = arith.maximumf %79, %80 : vector<1x16xf32>
    %82 = arith.truncf %81 : vector<1x16xf32> to vector<1x16xbf16>
    %c0_62 = arith.constant 0 : index
    %c0_63 = arith.constant 0 : index
    %c0_64 = arith.constant 0 : index
    %83 = vector.load %arg10[%c0_62, %c0_63, %c0_64] : memref<4x16x128xbf16, #tpu.memory_space<vmem>>, vector<1x16x128xbf16>
    %84 = vector.shape_cast %83 : vector<1x16x128xbf16> to vector<16x128xbf16>
    %cst_65 = arith.constant dense<0.000000e+00> : vector<1x128xf32>
    %85 = tpu.matmul %82, %84, %cst_65 {dimension_numbers = #tpu.dot_dimension_numbers<[1], [0], [0], [1], [0, 0, 1, 1], [], []>} : vector<1x16xbf16>, vector<16x128xbf16>, vector<1x128xf32> -> vector<1x128xf32>
    %c0_66 = arith.constant 0 : index
    %c0_67 = arith.constant 0 : index
    %c0_68 = arith.constant 0 : index
    %86 = vector.load %arg11[%c0_66, %c0_67, %c0_68] : memref<4x1x128xf32, #tpu.memory_space<vmem>>, vector<1x1x128xf32>
    %87 = vector.shape_cast %86 : vector<1x1x128xf32> to vector<1x128xf32>
    %88 = arith.addf %85, %87 : vector<1x128xf32>
    %c4_i32 = arith.constant 4 : i32
    %89 = vector.broadcast %c4_i32 : i32 to vector<1x128xi32>
    %90 = arith.cmpi slt, %1, %89 : vector<1x128xi32>
    %cst_69 = arith.constant -1.000000e+30 : f32
    %91 = vector.broadcast %cst_69 : f32 to vector<1x128xf32>
    %92 = arith.select %90, %88, %91 : vector<1x128xi1>, vector<1x128xf32>
    %cst_70 = arith.constant dense<0xFF800000> : vector<1xf32>
    %93 = vector.multi_reduction <maximumf>, %92, %cst_70 [1] : vector<1x128xf32> to vector<1xf32>
    %94 = vector.shape_cast %93 : vector<1xf32> to vector<1x1xf32>
    %95 = vector.broadcast %94 : vector<1x1xf32> to vector<1x128xf32>
    %96 = arith.subf %92, %95 : vector<1x128xf32>
    %97 = math.exp %96 : vector<1x128xf32>
    %cst_71 = arith.constant 0.000000e+00 : f32
    %98 = vector.broadcast %cst_71 : f32 to vector<1x128xf32>
    %99 = arith.select %90, %97, %98 : vector<1x128xi1>, vector<1x128xf32>
    %cst_72 = arith.constant dense<0.000000e+00> : vector<1xf32>
    %100 = vector.multi_reduction <add>, %99, %cst_72 [1] : vector<1x128xf32> to vector<1xf32>
    %101 = vector.shape_cast %100 : vector<1xf32> to vector<1x1xf32>
    %102 = math.log %101 : vector<1x1xf32>
    %103 = vector.broadcast %94 : vector<1x1xf32> to vector<1x128xf32>
    %104 = arith.subf %92, %103 : vector<1x128xf32>
    %105 = vector.broadcast %102 : vector<1x1xf32> to vector<1x128xf32>
    %106 = arith.subf %104, %105 : vector<1x128xf32>
    %c0_73 = arith.constant 0 : index
    %c0_74 = arith.constant 0 : index
    %c0_75 = arith.constant 0 : index
    %107 = vector.load %arg12[%c0_73, %c0_74, %c0_75] : memref<4x1x128xf32, #tpu.memory_space<vmem>>, vector<1x1x128xf32>
    %108 = vector.shape_cast %107 : vector<1x1x128xf32> to vector<1x128xf32>
    %109 = vector.shape_cast %106 : vector<1x128xf32> to vector<1x1x128xf32>
    tpu.vector_store %arg12[%c0_73, %c0_74, %c0_75], %109 {strides = array<i32>} : memref<4x1x128xf32, #tpu.memory_space<vmem>>, vector<1x1x128xf32>,
    %c0_76 = arith.constant 0 : index
    %110 = memref.load %arg0[%c0_76] : memref<4xi32, #tpu.memory_space<smem>>
    %c0_i32 = arith.constant 0 : i32
    %111 = arith.addi %c0_i32, %110 : i32
    %112 = vector.broadcast %111 : i32 to vector<1x16xi32>
    %113 = arith.cmpi eq, %0, %112 : vector<1x16xi32>
    %114 = arith.extui %113 : vector<1x16xi1> to vector<1x16xi32>
    %115 = arith.sitofp %114 : vector<1x16xi32> to vector<1x16xf32>
    %116 = arith.addf %2, %115 : vector<1x16xf32>
    %117 = arith.truncf %116 : vector<1x16xf32> to vector<1x16xbf16>
    %118 = arith.truncf %81 : vector<1x16xf32> to vector<1x16xbf16>
    %c1_77 = arith.constant 1 : index
    %c0_78 = arith.constant 0 : index
    %c0_79 = arith.constant 0 : index
    %c0_80 = arith.constant 0 : index
    %119 = vector.load %arg3[%c1_77, %c0_78, %c0_79, %c0_80] : memref<5x3x16x16xbf16, #tpu.memory_space<vmem>>, vector<1x1x16x16xbf16>
    %120 = vector.shape_cast %119 : vector<1x1x16x16xbf16> to vector<16x16xbf16>
    %cst_81 = arith.constant dense<0.000000e+00> : vector<1x16xf32>
    %121 = tpu.matmul %117, %120, %cst_81 {dimension_numbers = #tpu.dot_dimension_numbers<[1], [0], [0], [1], [0, 0, 1, 1], [], []>} : vector<1x16xbf16>, vector<16x16xbf16>, vector<1x16xf32> -> vector<1x16xf32>
    %c1_82 = arith.constant 1 : index
    %c0_83 = arith.constant 0 : index
    %c0_84 = arith.constant 0 : index
    %c0_85 = arith.constant 0 : index
    %122 = vector.load %arg4[%c1_82, %c0_83, %c0_84, %c0_85] : memref<5x3x1x16xf32, #tpu.memory_space<vmem>>, vector<1x1x1x16xf32>
    %123 = vector.shape_cast %122 : vector<1x1x1x16xf32> to vector<1x16xf32>
    %124 = arith.addf %121, %123 : vector<1x16xf32>
    %c1_86 = arith.constant 1 : index
    %c0_87 = arith.constant 0 : index
    %c0_88 = arith.constant 0 : index
    %c0_89 = arith.constant 0 : index
    %125 = vector.load %arg2[%c1_86, %c0_87, %c0_88, %c0_89] : memref<5x3x16x16xbf16, #tpu.memory_space<vmem>>, vector<1x1x16x16xbf16>
    %126 = vector.shape_cast %125 : vector<1x1x16x16xbf16> to vector<16x16xbf16>
    %cst_90 = arith.constant dense<0.000000e+00> : vector<1x16xf32>
    %127 = tpu.matmul %118, %126, %cst_90 {dimension_numbers = #tpu.dot_dimension_numbers<[1], [0], [0], [1], [0, 0, 1, 1], [], []>} : vector<1x16xbf16>, vector<16x16xbf16>, vector<1x16xf32> -> vector<1x16xf32>
    %128 = arith.addf %124, %127 : vector<1x16xf32>
    %c1_91 = arith.constant 1 : index
    %c1_92 = arith.constant 1 : index
    %c0_93 = arith.constant 0 : index
    %c0_94 = arith.constant 0 : index
    %129 = vector.load %arg3[%c1_91, %c1_92, %c0_93, %c0_94] : memref<5x3x16x16xbf16, #tpu.memory_space<vmem>>, vector<1x1x16x16xbf16>
    %130 = vector.shape_cast %129 : vector<1x1x16x16xbf16> to vector<16x16xbf16>
    %cst_95 = arith.constant dense<0.000000e+00> : vector<1x16xf32>
    %131 = tpu.matmul %117, %130, %cst_95 {dimension_numbers = #tpu.dot_dimension_numbers<[1], [0], [0], [1], [0, 0, 1, 1], [], []>} : vector<1x16xbf16>, vector<16x16xbf16>, vector<1x16xf32> -> vector<1x16xf32>
    %c1_96 = arith.constant 1 : index
    %c1_97 = arith.constant 1 : index
    %c0_98 = arith.constant 0 : index
    %c0_99 = arith.constant 0 : index
    %132 = vector.load %arg4[%c1_96, %c1_97, %c0_98, %c0_99] : memref<5x3x1x16xf32, #tpu.memory_space<vmem>>, vector<1x1x1x16xf32>
    %133 = vector.shape_cast %132 : vector<1x1x1x16xf32> to vector<1x16xf32>
    %134 = arith.addf %131, %133 : vector<1x16xf32>
    %c1_100 = arith.constant 1 : index
    %c1_101 = arith.constant 1 : index
    %c0_102 = arith.constant 0 : index
    %c0_103 = arith.constant 0 : index
    %135 = vector.load %arg2[%c1_100, %c1_101, %c0_102, %c0_103] : memref<5x3x16x16xbf16, #tpu.memory_space<vmem>>, vector<1x1x16x16xbf16>
    %136 = vector.shape_cast %135 : vector<1x1x16x16xbf16> to vector<16x16xbf16>
    %cst_104 = arith.constant dense<0.000000e+00> : vector<1x16xf32>
    %137 = tpu.matmul %118, %136, %cst_104 {dimension_numbers = #tpu.dot_dimension_numbers<[1], [0], [0], [1], [0, 0, 1, 1], [], []>} : vector<1x16xbf16>, vector<16x16xbf16>, vector<1x16xf32> -> vector<1x16xf32>
    %138 = arith.addf %134, %137 : vector<1x16xf32>
    %c1_105 = arith.constant 1 : index
    %c2_106 = arith.constant 2 : index
    %c0_107 = arith.constant 0 : index
    %c0_108 = arith.constant 0 : index
    %139 = vector.load %arg3[%c1_105, %c2_106, %c0_107, %c0_108] : memref<5x3x16x16xbf16, #tpu.memory_space<vmem>>, vector<1x1x16x16xbf16>
    %140 = vector.shape_cast %139 : vector<1x1x16x16xbf16> to vector<16x16xbf16>
    %cst_109 = arith.constant dense<0.000000e+00> : vector<1x16xf32>
    %141 = tpu.matmul %117, %140, %cst_109 {dimension_numbers = #tpu.dot_dimension_numbers<[1], [0], [0], [1], [0, 0, 1, 1], [], []>} : vector<1x16xbf16>, vector<16x16xbf16>, vector<1x16xf32> -> vector<1x16xf32>
    %c1_110 = arith.constant 1 : index
    %c2_111 = arith.constant 2 : index
    %c0_112 = arith.constant 0 : index
    %c0_113 = arith.constant 0 : index
    %142 = vector.load %arg4[%c1_110, %c2_111, %c0_112, %c0_113] : memref<5x3x1x16xf32, #tpu.memory_space<vmem>>, vector<1x1x1x16xf32>
    %143 = vector.shape_cast %142 : vector<1x1x1x16xf32> to vector<1x16xf32>
    %144 = arith.addf %141, %143 : vector<1x16xf32>
    %c1_114 = arith.constant 1 : index
    %c2_115 = arith.constant 2 : index
    %c0_116 = arith.constant 0 : index
    %c0_117 = arith.constant 0 : index
    %145 = vector.load %arg2[%c1_114, %c2_115, %c0_116, %c0_117] : memref<5x3x16x16xbf16, #tpu.memory_space<vmem>>, vector<1x1x16x16xbf16>
    %146 = vector.shape_cast %145 : vector<1x1x16x16xbf16> to vector<16x16xbf16>
    %cst_118 = arith.constant dense<0.000000e+00> : vector<1x16xf32>
    %147 = tpu.matmul %118, %146, %cst_118 {dimension_numbers = #tpu.dot_dimension_numbers<[1], [0], [0], [1], [0, 0, 1, 1], [], []>} : vector<1x16xbf16>, vector<16x16xbf16>, vector<1x16xf32> -> vector<1x16xf32>
    %148 = arith.addf %144, %147 : vector<1x16xf32>
    %149 = arith.negf %148 : vector<1x16xf32>
    %150 = math.exp %149 : vector<1x16xf32>
    %cst_119 = arith.constant 1.000000e+00 : f32
    %151 = vector.broadcast %cst_119 : f32 to vector<1x16xf32>
    %152 = arith.addf %151, %150 : vector<1x16xf32>
    %153 = arith.divf %151, %152 : vector<1x16xf32>
    %154 = arith.negf %128 : vector<1x16xf32>
    %155 = math.exp %154 : vector<1x16xf32>
    %cst_120 = arith.constant 1.000000e+00 : f32
    %156 = vector.broadcast %cst_120 : f32 to vector<1x16xf32>
    %157 = arith.addf %156, %155 : vector<1x16xf32>
    %158 = arith.divf %156, %157 : vector<1x16xf32>
    %159 = math.tanh %138 : vector<1x16xf32>
    %160 = arith.mulf %158, %159 : vector<1x16xf32>
    %161 = math.tanh %160 : vector<1x16xf32>
    %162 = arith.mulf %153, %161 : vector<1x16xf32>
    %163 = arith.truncf %162 : vector<1x16xf32> to vector<1x16xbf16>
    %c1_121 = arith.constant 1 : index
    %c0_122 = arith.constant 0 : index
    %c0_123 = arith.constant 0 : index
    %164 = vector.load %arg7[%c1_121, %c0_122, %c0_123] : memref<5x16x16xbf16, #tpu.memory_space<vmem>>, vector<1x16x16xbf16>
    %165 = vector.shape_cast %164 : vector<1x16x16xbf16> to vector<16x16xbf16>
    %cst_124 = arith.constant dense<0.000000e+00> : vector<1x16xf32>
    %166 = tpu.matmul %163, %165, %cst_124 {dimension_numbers = #tpu.dot_dimension_numbers<[1], [0], [0], [1], [0, 0, 1, 1], [], []>} : vector<1x16xbf16>, vector<16x16xbf16>, vector<1x16xf32> -> vector<1x16xf32>
    %c1_125 = arith.constant 1 : index
    %c0_126 = arith.constant 0 : index
    %c0_127 = arith.constant 0 : index
    %167 = vector.load %arg9[%c1_125, %c0_126, %c0_127] : memref<5x1x16xf32, #tpu.memory_space<vmem>>, vector<1x1x16xf32>
    %168 = vector.shape_cast %167 : vector<1x1x16xf32> to vector<1x16xf32>
    %169 = arith.addf %166, %168 : vector<1x16xf32>
    %cst_128 = arith.constant 0.000000e+00 : f32
    %170 = vector.broadcast %cst_128 : f32 to vector<1x16xf32>
    %171 = arith.maximumf %169, %170 : vector<1x16xf32>
    %172 = arith.truncf %171 : vector<1x16xf32> to vector<1x16xbf16>
    %c1_129 = arith.constant 1 : index
    %c0_130 = arith.constant 0 : index
    %c0_131 = arith.constant 0 : index
    %173 = vector.load %arg10[%c1_129, %c0_130, %c0_131] : memref<4x16x128xbf16, #tpu.memory_space<vmem>>, vector<1x16x128xbf16>
    %174 = vector.shape_cast %173 : vector<1x16x128xbf16> to vector<16x128xbf16>
    %cst_132 = arith.constant dense<0.000000e+00> : vector<1x128xf32>
    %175 = tpu.matmul %172, %174, %cst_132 {dimension_numbers = #tpu.dot_dimension_numbers<[1], [0], [0], [1], [0, 0, 1, 1], [], []>} : vector<1x16xbf16>, vector<16x128xbf16>, vector<1x128xf32> -> vector<1x128xf32>
    %c1_133 = arith.constant 1 : index
    %c0_134 = arith.constant 0 : index
    %c0_135 = arith.constant 0 : index
    %176 = vector.load %arg11[%c1_133, %c0_134, %c0_135] : memref<4x1x128xf32, #tpu.memory_space<vmem>>, vector<1x1x128xf32>
    %177 = vector.shape_cast %176 : vector<1x1x128xf32> to vector<1x128xf32>
    %178 = arith.addf %175, %177 : vector<1x128xf32>
    %c3_i32 = arith.constant 3 : i32
    %179 = vector.broadcast %c3_i32 : i32 to vector<1x128xi32>
    %180 = arith.cmpi slt, %1, %179 : vector<1x128xi32>
    %cst_136 = arith.constant -1.000000e+30 : f32
    %181 = vector.broadcast %cst_136 : f32 to vector<1x128xf32>
    %182 = arith.select %180, %178, %181 : vector<1x128xi1>, vector<1x128xf32>
    %cst_137 = arith.constant dense<0xFF800000> : vector<1xf32>
    %183 = vector.multi_reduction <maximumf>, %182, %cst_137 [1] : vector<1x128xf32> to vector<1xf32>
    %184 = vector.shape_cast %183 : vector<1xf32> to vector<1x1xf32>
    %185 = vector.broadcast %184 : vector<1x1xf32> to vector<1x128xf32>
    %186 = arith.subf %182, %185 : vector<1x128xf32>
    %187 = math.exp %186 : vector<1x128xf32>
    %cst_138 = arith.constant 0.000000e+00 : f32
    %188 = vector.broadcast %cst_138 : f32 to vector<1x128xf32>
    %189 = arith.select %180, %187, %188 : vector<1x128xi1>, vector<1x128xf32>
    %cst_139 = arith.constant dense<0.000000e+00> : vector<1xf32>
    %190 = vector.multi_reduction <add>, %189, %cst_139 [1] : vector<1x128xf32> to vector<1xf32>
    %191 = vector.shape_cast %190 : vector<1xf32> to vector<1x1xf32>
    %192 = math.log %191 : vector<1x1xf32>
    %193 = vector.broadcast %184 : vector<1x1xf32> to vector<1x128xf32>
    %194 = arith.subf %182, %193 : vector<1x128xf32>
    %195 = vector.broadcast %192 : vector<1x1xf32> to vector<1x128xf32>
    %196 = arith.subf %194, %195 : vector<1x128xf32>
    %c1_140 = arith.constant 1 : index
    %c0_141 = arith.constant 0 : index
    %c0_142 = arith.constant 0 : index
    %197 = vector.load %arg12[%c1_140, %c0_141, %c0_142] : memref<4x1x128xf32, #tpu.memory_space<vmem>>, vector<1x1x128xf32>
    %198 = vector.shape_cast %197 : vector<1x1x128xf32> to vector<1x128xf32>
    %199 = vector.shape_cast %196 : vector<1x128xf32> to vector<1x1x128xf32>
    tpu.vector_store %arg12[%c1_140, %c0_141, %c0_142], %199 {strides = array<i32>} : memref<4x1x128xf32, #tpu.memory_space<vmem>>, vector<1x1x128xf32>,
    %c1_143 = arith.constant 1 : index
    %200 = memref.load %arg0[%c1_143] : memref<4xi32, #tpu.memory_space<smem>>
    %c4_i32_144 = arith.constant 4 : i32
    %201 = arith.addi %c4_i32_144, %200 : i32
    %202 = vector.broadcast %201 : i32 to vector<1x16xi32>
    %203 = arith.cmpi eq, %0, %202 : vector<1x16xi32>
    %204 = arith.extui %203 : vector<1x16xi1> to vector<1x16xi32>
    %205 = arith.sitofp %204 : vector<1x16xi32> to vector<1x16xf32>
    %206 = arith.addf %116, %205 : vector<1x16xf32>
    %207 = arith.truncf %206 : vector<1x16xf32> to vector<1x16xbf16>
    %208 = arith.truncf %171 : vector<1x16xf32> to vector<1x16xbf16>
    %c2_145 = arith.constant 2 : index
    %c0_146 = arith.constant 0 : index
    %c0_147 = arith.constant 0 : index
    %c0_148 = arith.constant 0 : index
    %209 = vector.load %arg3[%c2_145, %c0_146, %c0_147, %c0_148] : memref<5x3x16x16xbf16, #tpu.memory_space<vmem>>, vector<1x1x16x16xbf16>
    %210 = vector.shape_cast %209 : vector<1x1x16x16xbf16> to vector<16x16xbf16>
    %cst_149 = arith.constant dense<0.000000e+00> : vector<1x16xf32>
    %211 = tpu.matmul %207, %210, %cst_149 {dimension_numbers = #tpu.dot_dimension_numbers<[1], [0], [0], [1], [0, 0, 1, 1], [], []>} : vector<1x16xbf16>, vector<16x16xbf16>, vector<1x16xf32> -> vector<1x16xf32>
    %c2_150 = arith.constant 2 : index
    %c0_151 = arith.constant 0 : index
    %c0_152 = arith.constant 0 : index
    %c0_153 = arith.constant 0 : index
    %212 = vector.load %arg4[%c2_150, %c0_151, %c0_152, %c0_153] : memref<5x3x1x16xf32, #tpu.memory_space<vmem>>, vector<1x1x1x16xf32>
    %213 = vector.shape_cast %212 : vector<1x1x1x16xf32> to vector<1x16xf32>
    %214 = arith.addf %211, %213 : vector<1x16xf32>
    %c2_154 = arith.constant 2 : index
    %c0_155 = arith.constant 0 : index
    %c0_156 = arith.constant 0 : index
    %c0_157 = arith.constant 0 : index
    %215 = vector.load %arg2[%c2_154, %c0_155, %c0_156, %c0_157] : memref<5x3x16x16xbf16, #tpu.memory_space<vmem>>, vector<1x1x16x16xbf16>
    %216 = vector.shape_cast %215 : vector<1x1x16x16xbf16> to vector<16x16xbf16>
    %cst_158 = arith.constant dense<0.000000e+00> : vector<1x16xf32>
    %217 = tpu.matmul %208, %216, %cst_158 {dimension_numbers = #tpu.dot_dimension_numbers<[1], [0], [0], [1], [0, 0, 1, 1], [], []>} : vector<1x16xbf16>, vector<16x16xbf16>, vector<1x16xf32> -> vector<1x16xf32>
    %218 = arith.addf %214, %217 : vector<1x16xf32>
    %c2_159 = arith.constant 2 : index
    %c1_160 = arith.constant 1 : index
    %c0_161 = arith.constant 0 : index
    %c0_162 = arith.constant 0 : index
    %219 = vector.load %arg3[%c2_159, %c1_160, %c0_161, %c0_162] : memref<5x3x16x16xbf16, #tpu.memory_space<vmem>>, vector<1x1x16x16xbf16>
    %220 = vector.shape_cast %219 : vector<1x1x16x16xbf16> to vector<16x16xbf16>
    %cst_163 = arith.constant dense<0.000000e+00> : vector<1x16xf32>
    %221 = tpu.matmul %207, %220, %cst_163 {dimension_numbers = #tpu.dot_dimension_numbers<[1], [0], [0], [1], [0, 0, 1, 1], [], []>} : vector<1x16xbf16>, vector<16x16xbf16>, vector<1x16xf32> -> vector<1x16xf32>
    %c2_164 = arith.constant 2 : index
    %c1_165 = arith.constant 1 : index
    %c0_166 = arith.constant 0 : index
    %c0_167 = arith.constant 0 : index
    %222 = vector.load %arg4[%c2_164, %c1_165, %c0_166, %c0_167] : memref<5x3x1x16xf32, #tpu.memory_space<vmem>>, vector<1x1x1x16xf32>
    %223 = vector.shape_cast %222 : vector<1x1x1x16xf32> to vector<1x16xf32>
    %224 = arith.addf %221, %223 : vector<1x16xf32>
    %c2_168 = arith.constant 2 : index
    %c1_169 = arith.constant 1 : index
    %c0_170 = arith.constant 0 : index
    %c0_171 = arith.constant 0 : index
    %225 = vector.load %arg2[%c2_168, %c1_169, %c0_170, %c0_171] : memref<5x3x16x16xbf16, #tpu.memory_space<vmem>>, vector<1x1x16x16xbf16>
    %226 = vector.shape_cast %225 : vector<1x1x16x16xbf16> to vector<16x16xbf16>
    %cst_172 = arith.constant dense<0.000000e+00> : vector<1x16xf32>
    %227 = tpu.matmul %208, %226, %cst_172 {dimension_numbers = #tpu.dot_dimension_numbers<[1], [0], [0], [1], [0, 0, 1, 1], [], []>} : vector<1x16xbf16>, vector<16x16xbf16>, vector<1x16xf32> -> vector<1x16xf32>
    %228 = arith.addf %224, %227 : vector<1x16xf32>
    %c2_173 = arith.constant 2 : index
    %c2_174 = arith.constant 2 : index
    %c0_175 = arith.constant 0 : index
    %c0_176 = arith.constant 0 : index
    %229 = vector.load %arg3[%c2_173, %c2_174, %c0_175, %c0_176] : memref<5x3x16x16xbf16, #tpu.memory_space<vmem>>, vector<1x1x16x16xbf16>
    %230 = vector.shape_cast %229 : vector<1x1x16x16xbf16> to vector<16x16xbf16>
    %cst_177 = arith.constant dense<0.000000e+00> : vector<1x16xf32>
    %231 = tpu.matmul %207, %230, %cst_177 {dimension_numbers = #tpu.dot_dimension_numbers<[1], [0], [0], [1], [0, 0, 1, 1], [], []>} : vector<1x16xbf16>, vector<16x16xbf16>, vector<1x16xf32> -> vector<1x16xf32>
    %c2_178 = arith.constant 2 : index
    %c2_179 = arith.constant 2 : index
    %c0_180 = arith.constant 0 : index
    %c0_181 = arith.constant 0 : index
    %232 = vector.load %arg4[%c2_178, %c2_179, %c0_180, %c0_181] : memref<5x3x1x16xf32, #tpu.memory_space<vmem>>, vector<1x1x1x16xf32>
    %233 = vector.shape_cast %232 : vector<1x1x1x16xf32> to vector<1x16xf32>
    %234 = arith.addf %231, %233 : vector<1x16xf32>
    %c2_182 = arith.constant 2 : index
    %c2_183 = arith.constant 2 : index
    %c0_184 = arith.constant 0 : index
    %c0_185 = arith.constant 0 : index
    %235 = vector.load %arg2[%c2_182, %c2_183, %c0_184, %c0_185] : memref<5x3x16x16xbf16, #tpu.memory_space<vmem>>, vector<1x1x16x16xbf16>
    %236 = vector.shape_cast %235 : vector<1x1x16x16xbf16> to vector<16x16xbf16>
    %cst_186 = arith.constant dense<0.000000e+00> : vector<1x16xf32>
    %237 = tpu.matmul %208, %236, %cst_186 {dimension_numbers = #tpu.dot_dimension_numbers<[1], [0], [0], [1], [0, 0, 1, 1], [], []>} : vector<1x16xbf16>, vector<16x16xbf16>, vector<1x16xf32> -> vector<1x16xf32>
    %238 = arith.addf %234, %237 : vector<1x16xf32>
    %239 = arith.negf %238 : vector<1x16xf32>
    %240 = math.exp %239 : vector<1x16xf32>
    %cst_187 = arith.constant 1.000000e+00 : f32
    %241 = vector.broadcast %cst_187 : f32 to vector<1x16xf32>
    %242 = arith.addf %241, %240 : vector<1x16xf32>
    %243 = arith.divf %241, %242 : vector<1x16xf32>
    %244 = arith.negf %218 : vector<1x16xf32>
    %245 = math.exp %244 : vector<1x16xf32>
    %cst_188 = arith.constant 1.000000e+00 : f32
    %246 = vector.broadcast %cst_188 : f32 to vector<1x16xf32>
    %247 = arith.addf %246, %245 : vector<1x16xf32>
    %248 = arith.divf %246, %247 : vector<1x16xf32>
    %249 = math.tanh %228 : vector<1x16xf32>
    %250 = arith.mulf %248, %249 : vector<1x16xf32>
    %251 = math.tanh %250 : vector<1x16xf32>
    %252 = arith.mulf %243, %251 : vector<1x16xf32>
    %253 = arith.truncf %252 : vector<1x16xf32> to vector<1x16xbf16>
    %c2_189 = arith.constant 2 : index
    %c0_190 = arith.constant 0 : index
    %c0_191 = arith.constant 0 : index
    %254 = vector.load %arg7[%c2_189, %c0_190, %c0_191] : memref<5x16x16xbf16, #tpu.memory_space<vmem>>, vector<1x16x16xbf16>
    %255 = vector.shape_cast %254 : vector<1x16x16xbf16> to vector<16x16xbf16>
    %cst_192 = arith.constant dense<0.000000e+00> : vector<1x16xf32>
    %256 = tpu.matmul %253, %255, %cst_192 {dimension_numbers = #tpu.dot_dimension_numbers<[1], [0], [0], [1], [0, 0, 1, 1], [], []>} : vector<1x16xbf16>, vector<16x16xbf16>, vector<1x16xf32> -> vector<1x16xf32>
    %c2_193 = arith.constant 2 : index
    %c0_194 = arith.constant 0 : index
    %c0_195 = arith.constant 0 : index
    %257 = vector.load %arg9[%c2_193, %c0_194, %c0_195] : memref<5x1x16xf32, #tpu.memory_space<vmem>>, vector<1x1x16xf32>
    %258 = vector.shape_cast %257 : vector<1x1x16xf32> to vector<1x16xf32>
    %259 = arith.addf %256, %258 : vector<1x16xf32>
    %cst_196 = arith.constant 0.000000e+00 : f32
    %260 = vector.broadcast %cst_196 : f32 to vector<1x16xf32>
    %261 = arith.maximumf %259, %260 : vector<1x16xf32>
    %262 = arith.truncf %261 : vector<1x16xf32> to vector<1x16xbf16>
    %c2_197 = arith.constant 2 : index
    %c0_198 = arith.constant 0 : index
    %c0_199 = arith.constant 0 : index
    %263 = vector.load %arg10[%c2_197, %c0_198, %c0_199] : memref<4x16x128xbf16, #tpu.memory_space<vmem>>, vector<1x16x128xbf16>
    %264 = vector.shape_cast %263 : vector<1x16x128xbf16> to vector<16x128xbf16>
    %cst_200 = arith.constant dense<0.000000e+00> : vector<1x128xf32>
    %265 = tpu.matmul %262, %264, %cst_200 {dimension_numbers = #tpu.dot_dimension_numbers<[1], [0], [0], [1], [0, 0, 1, 1], [], []>} : vector<1x16xbf16>, vector<16x128xbf16>, vector<1x128xf32> -> vector<1x128xf32>
    %c2_201 = arith.constant 2 : index
    %c0_202 = arith.constant 0 : index
    %c0_203 = arith.constant 0 : index
    %266 = vector.load %arg11[%c2_201, %c0_202, %c0_203] : memref<4x1x128xf32, #tpu.memory_space<vmem>>, vector<1x1x128xf32>
    %267 = vector.shape_cast %266 : vector<1x1x128xf32> to vector<1x128xf32>
    %268 = arith.addf %265, %267 : vector<1x128xf32>
    %c2_i32 = arith.constant 2 : i32
    %269 = vector.broadcast %c2_i32 : i32 to vector<1x128xi32>
    %270 = arith.cmpi slt, %1, %269 : vector<1x128xi32>
    %cst_204 = arith.constant -1.000000e+30 : f32
    %271 = vector.broadcast %cst_204 : f32 to vector<1x128xf32>
    %272 = arith.select %270, %268, %271 : vector<1x128xi1>, vector<1x128xf32>
    %cst_205 = arith.constant dense<0xFF800000> : vector<1xf32>
    %273 = vector.multi_reduction <maximumf>, %272, %cst_205 [1] : vector<1x128xf32> to vector<1xf32>
    %274 = vector.shape_cast %273 : vector<1xf32> to vector<1x1xf32>
    %275 = vector.broadcast %274 : vector<1x1xf32> to vector<1x128xf32>
    %276 = arith.subf %272, %275 : vector<1x128xf32>
    %277 = math.exp %276 : vector<1x128xf32>
    %cst_206 = arith.constant 0.000000e+00 : f32
    %278 = vector.broadcast %cst_206 : f32 to vector<1x128xf32>
    %279 = arith.select %270, %277, %278 : vector<1x128xi1>, vector<1x128xf32>
    %cst_207 = arith.constant dense<0.000000e+00> : vector<1xf32>
    %280 = vector.multi_reduction <add>, %279, %cst_207 [1] : vector<1x128xf32> to vector<1xf32>
    %281 = vector.shape_cast %280 : vector<1xf32> to vector<1x1xf32>
    %282 = math.log %281 : vector<1x1xf32>
    %283 = vector.broadcast %274 : vector<1x1xf32> to vector<1x128xf32>
    %284 = arith.subf %272, %283 : vector<1x128xf32>
    %285 = vector.broadcast %282 : vector<1x1xf32> to vector<1x128xf32>
    %286 = arith.subf %284, %285 : vector<1x128xf32>
    %c2_208 = arith.constant 2 : index
    %c0_209 = arith.constant 0 : index
    %c0_210 = arith.constant 0 : index
    %287 = vector.load %arg12[%c2_208, %c0_209, %c0_210] : memref<4x1x128xf32, #tpu.memory_space<vmem>>, vector<1x1x128xf32>
    %288 = vector.shape_cast %287 : vector<1x1x128xf32> to vector<1x128xf32>
    %289 = vector.shape_cast %286 : vector<1x128xf32> to vector<1x1x128xf32>
    tpu.vector_store %arg12[%c2_208, %c0_209, %c0_210], %289 {strides = array<i32>} : memref<4x1x128xf32, #tpu.memory_space<vmem>>, vector<1x1x128xf32>,
    %c2_211 = arith.constant 2 : index
    %290 = memref.load %arg0[%c2_211] : memref<4xi32, #tpu.memory_space<smem>>
    %c7_i32 = arith.constant 7 : i32
    %291 = arith.addi %c7_i32, %290 : i32
    %292 = vector.broadcast %291 : i32 to vector<1x16xi32>
    %293 = arith.cmpi eq, %0, %292 : vector<1x16xi32>
    %294 = arith.extui %293 : vector<1x16xi1> to vector<1x16xi32>
    %295 = arith.sitofp %294 : vector<1x16xi32> to vector<1x16xf32>
    %296 = arith.addf %206, %295 : vector<1x16xf32>
    %297 = arith.truncf %296 : vector<1x16xf32> to vector<1x16xbf16>
    %298 = arith.truncf %261 : vector<1x16xf32> to vector<1x16xbf16>
    %c3 = arith.constant 3 : index
    %c0_212 = arith.constant 0 : index
    %c0_213 = arith.constant 0 : index
    %c0_214 = arith.constant 0 : index
    %299 = vector.load %arg3[%c3, %c0_212, %c0_213, %c0_214] : memref<5x3x16x16xbf16, #tpu.memory_space<vmem>>, vector<1x1x16x16xbf16>
    %300 = vector.shape_cast %299 : vector<1x1x16x16xbf16> to vector<16x16xbf16>
    %cst_215 = arith.constant dense<0.000000e+00> : vector<1x16xf32>
    %301 = tpu.matmul %297, %300, %cst_215 {dimension_numbers = #tpu.dot_dimension_numbers<[1], [0], [0], [1], [0, 0, 1, 1], [], []>} : vector<1x16xbf16>, vector<16x16xbf16>, vector<1x16xf32> -> vector<1x16xf32>
    %c3_216 = arith.constant 3 : index
    %c0_217 = arith.constant 0 : index
    %c0_218 = arith.constant 0 : index
    %c0_219 = arith.constant 0 : index
    %302 = vector.load %arg4[%c3_216, %c0_217, %c0_218, %c0_219] : memref<5x3x1x16xf32, #tpu.memory_space<vmem>>, vector<1x1x1x16xf32>
    %303 = vector.shape_cast %302 : vector<1x1x1x16xf32> to vector<1x16xf32>
    %304 = arith.addf %301, %303 : vector<1x16xf32>
    %c3_220 = arith.constant 3 : index
    %c0_221 = arith.constant 0 : index
    %c0_222 = arith.constant 0 : index
    %c0_223 = arith.constant 0 : index
    %305 = vector.load %arg2[%c3_220, %c0_221, %c0_222, %c0_223] : memref<5x3x16x16xbf16, #tpu.memory_space<vmem>>, vector<1x1x16x16xbf16>
    %306 = vector.shape_cast %305 : vector<1x1x16x16xbf16> to vector<16x16xbf16>
    %cst_224 = arith.constant dense<0.000000e+00> : vector<1x16xf32>
    %307 = tpu.matmul %298, %306, %cst_224 {dimension_numbers = #tpu.dot_dimension_numbers<[1], [0], [0], [1], [0, 0, 1, 1], [], []>} : vector<1x16xbf16>, vector<16x16xbf16>, vector<1x16xf32> -> vector<1x16xf32>
    %308 = arith.addf %304, %307 : vector<1x16xf32>
    %c3_225 = arith.constant 3 : index
    %c1_226 = arith.constant 1 : index
    %c0_227 = arith.constant 0 : index
    %c0_228 = arith.constant 0 : index
    %309 = vector.load %arg3[%c3_225, %c1_226, %c0_227, %c0_228] : memref<5x3x16x16xbf16, #tpu.memory_space<vmem>>, vector<1x1x16x16xbf16>
    %310 = vector.shape_cast %309 : vector<1x1x16x16xbf16> to vector<16x16xbf16>
    %cst_229 = arith.constant dense<0.000000e+00> : vector<1x16xf32>
    %311 = tpu.matmul %297, %310, %cst_229 {dimension_numbers = #tpu.dot_dimension_numbers<[1], [0], [0], [1], [0, 0, 1, 1], [], []>} : vector<1x16xbf16>, vector<16x16xbf16>, vector<1x16xf32> -> vector<1x16xf32>
    %c3_230 = arith.constant 3 : index
    %c1_231 = arith.constant 1 : index
    %c0_232 = arith.constant 0 : index
    %c0_233 = arith.constant 0 : index
    %312 = vector.load %arg4[%c3_230, %c1_231, %c0_232, %c0_233] : memref<5x3x1x16xf32, #tpu.memory_space<vmem>>, vector<1x1x1x16xf32>
    %313 = vector.shape_cast %312 : vector<1x1x1x16xf32> to vector<1x16xf32>
    %314 = arith.addf %311, %313 : vector<1x16xf32>
    %c3_234 = arith.constant 3 : index
    %c1_235 = arith.constant 1 : index
    %c0_236 = arith.constant 0 : index
    %c0_237 = arith.constant 0 : index
    %315 = vector.load %arg2[%c3_234, %c1_235, %c0_236, %c0_237] : memref<5x3x16x16xbf16, #tpu.memory_space<vmem>>, vector<1x1x16x16xbf16>
    %316 = vector.shape_cast %315 : vector<1x1x16x16xbf16> to vector<16x16xbf16>
    %cst_238 = arith.constant dense<0.000000e+00> : vector<1x16xf32>
    %317 = tpu.matmul %298, %316, %cst_238 {dimension_numbers = #tpu.dot_dimension_numbers<[1], [0], [0], [1], [0, 0, 1, 1], [], []>} : vector<1x16xbf16>, vector<16x16xbf16>, vector<1x16xf32> -> vector<1x16xf32>
    %318 = arith.addf %314, %317 : vector<1x16xf32>
    %c3_239 = arith.constant 3 : index
    %c2_240 = arith.constant 2 : index
    %c0_241 = arith.constant 0 : index
    %c0_242 = arith.constant 0 : index
    %319 = vector.load %arg3[%c3_239, %c2_240, %c0_241, %c0_242] : memref<5x3x16x16xbf16, #tpu.memory_space<vmem>>, vector<1x1x16x16xbf16>
    %320 = vector.shape_cast %319 : vector<1x1x16x16xbf16> to vector<16x16xbf16>
    %cst_243 = arith.constant dense<0.000000e+00> : vector<1x16xf32>
    %321 = tpu.matmul %297, %320, %cst_243 {dimension_numbers = #tpu.dot_dimension_numbers<[1], [0], [0], [1], [0, 0, 1, 1], [], []>} : vector<1x16xbf16>, vector<16x16xbf16>, vector<1x16xf32> -> vector<1x16xf32>
    %c3_244 = arith.constant 3 : index
    %c2_245 = arith.constant 2 : index
    %c0_246 = arith.constant 0 : index
    %c0_247 = arith.constant 0 : index
    %322 = vector.load %arg4[%c3_244, %c2_245, %c0_246, %c0_247] : memref<5x3x1x16xf32, #tpu.memory_space<vmem>>, vector<1x1x1x16xf32>
    %323 = vector.shape_cast %322 : vector<1x1x1x16xf32> to vector<1x16xf32>
    %324 = arith.addf %321, %323 : vector<1x16xf32>
    %c3_248 = arith.constant 3 : index
    %c2_249 = arith.constant 2 : index
    %c0_250 = arith.constant 0 : index
    %c0_251 = arith.constant 0 : index
    %325 = vector.load %arg2[%c3_248, %c2_249, %c0_250, %c0_251] : memref<5x3x16x16xbf16, #tpu.memory_space<vmem>>, vector<1x1x16x16xbf16>
    %326 = vector.shape_cast %325 : vector<1x1x16x16xbf16> to vector<16x16xbf16>
    %cst_252 = arith.constant dense<0.000000e+00> : vector<1x16xf32>
    %327 = tpu.matmul %298, %326, %cst_252 {dimension_numbers = #tpu.dot_dimension_numbers<[1], [0], [0], [1], [0, 0, 1, 1], [], []>} : vector<1x16xbf16>, vector<16x16xbf16>, vector<1x16xf32> -> vector<1x16xf32>
    %328 = arith.addf %324, %327 : vector<1x16xf32>
    %329 = arith.negf %328 : vector<1x16xf32>
    %330 = math.exp %329 : vector<1x16xf32>
    %cst_253 = arith.constant 1.000000e+00 : f32
    %331 = vector.broadcast %cst_253 : f32 to vector<1x16xf32>
    %332 = arith.addf %331, %330 : vector<1x16xf32>
    %333 = arith.divf %331, %332 : vector<1x16xf32>
    %334 = arith.negf %308 : vector<1x16xf32>
    %335 = math.exp %334 : vector<1x16xf32>
    %cst_254 = arith.constant 1.000000e+00 : f32
    %336 = vector.broadcast %cst_254 : f32 to vector<1x16xf32>
    %337 = arith.addf %336, %335 : vector<1x16xf32>
    %338 = arith.divf %336, %337 : vector<1x16xf32>
    %339 = math.tanh %318 : vector<1x16xf32>
    %340 = arith.mulf %338, %339 : vector<1x16xf32>
    %341 = math.tanh %340 : vector<1x16xf32>
    %342 = arith.mulf %333, %341 : vector<1x16xf32>
    %343 = arith.truncf %342 : vector<1x16xf32> to vector<1x16xbf16>
    %c3_255 = arith.constant 3 : index
    %c0_256 = arith.constant 0 : index
    %c0_257 = arith.constant 0 : index
    %344 = vector.load %arg7[%c3_255, %c0_256, %c0_257] : memref<5x16x16xbf16, #tpu.memory_space<vmem>>, vector<1x16x16xbf16>
    %345 = vector.shape_cast %344 : vector<1x16x16xbf16> to vector<16x16xbf16>
    %cst_258 = arith.constant dense<0.000000e+00> : vector<1x16xf32>
    %346 = tpu.matmul %343, %345, %cst_258 {dimension_numbers = #tpu.dot_dimension_numbers<[1], [0], [0], [1], [0, 0, 1, 1], [], []>} : vector<1x16xbf16>, vector<16x16xbf16>, vector<1x16xf32> -> vector<1x16xf32>
    %c3_259 = arith.constant 3 : index
    %c0_260 = arith.constant 0 : index
    %c0_261 = arith.constant 0 : index
    %347 = vector.load %arg9[%c3_259, %c0_260, %c0_261] : memref<5x1x16xf32, #tpu.memory_space<vmem>>, vector<1x1x16xf32>
    %348 = vector.shape_cast %347 : vector<1x1x16xf32> to vector<1x16xf32>
    %349 = arith.addf %346, %348 : vector<1x16xf32>
    %cst_262 = arith.constant 0.000000e+00 : f32
    %350 = vector.broadcast %cst_262 : f32 to vector<1x16xf32>
    %351 = arith.maximumf %349, %350 : vector<1x16xf32>
    %352 = arith.truncf %351 : vector<1x16xf32> to vector<1x16xbf16>
    %c3_263 = arith.constant 3 : index
    %c0_264 = arith.constant 0 : index
    %c0_265 = arith.constant 0 : index
    %353 = vector.load %arg10[%c3_263, %c0_264, %c0_265] : memref<4x16x128xbf16, #tpu.memory_space<vmem>>, vector<1x16x128xbf16>
    %354 = vector.shape_cast %353 : vector<1x16x128xbf16> to vector<16x128xbf16>
    %cst_266 = arith.constant dense<0.000000e+00> : vector<1x128xf32>
    %355 = tpu.matmul %352, %354, %cst_266 {dimension_numbers = #tpu.dot_dimension_numbers<[1], [0], [0], [1], [0, 0, 1, 1], [], []>} : vector<1x16xbf16>, vector<16x128xbf16>, vector<1x128xf32> -> vector<1x128xf32>
    %c3_267 = arith.constant 3 : index
    %c0_268 = arith.constant 0 : index
    %c0_269 = arith.constant 0 : index
    %356 = vector.load %arg11[%c3_267, %c0_268, %c0_269] : memref<4x1x128xf32, #tpu.memory_space<vmem>>, vector<1x1x128xf32>
    %357 = vector.shape_cast %356 : vector<1x1x128xf32> to vector<1x128xf32>
    %358 = arith.addf %355, %357 : vector<1x128xf32>
    %c3_i32_270 = arith.constant 3 : i32
    %359 = vector.broadcast %c3_i32_270 : i32 to vector<1x128xi32>
    %360 = arith.cmpi slt, %1, %359 : vector<1x128xi32>
    %cst_271 = arith.constant -1.000000e+30 : f32
    %361 = vector.broadcast %cst_271 : f32 to vector<1x128xf32>
    %362 = arith.select %360, %358, %361 : vector<1x128xi1>, vector<1x128xf32>
    %cst_272 = arith.constant dense<0xFF800000> : vector<1xf32>
    %363 = vector.multi_reduction <maximumf>, %362, %cst_272 [1] : vector<1x128xf32> to vector<1xf32>
    %364 = vector.shape_cast %363 : vector<1xf32> to vector<1x1xf32>
    %365 = vector.broadcast %364 : vector<1x1xf32> to vector<1x128xf32>
    %366 = arith.subf %362, %365 : vector<1x128xf32>
    %367 = math.exp %366 : vector<1x128xf32>
    %cst_273 = arith.constant 0.000000e+00 : f32
    %368 = vector.broadcast %cst_273 : f32 to vector<1x128xf32>
    %369 = arith.select %360, %367, %368 : vector<1x128xi1>, vector<1x128xf32>
    %cst_274 = arith.constant dense<0.000000e+00> : vector<1xf32>
    %370 = vector.multi_reduction <add>, %369, %cst_274 [1] : vector<1x128xf32> to vector<1xf32>
    %371 = vector.shape_cast %370 : vector<1xf32> to vector<1x1xf32>
    %372 = math.log %371 : vector<1x1xf32>
    %373 = vector.broadcast %364 : vector<1x1xf32> to vector<1x128xf32>
    %374 = arith.subf %362, %373 : vector<1x128xf32>
    %375 = vector.broadcast %372 : vector<1x1xf32> to vector<1x128xf32>
    %376 = arith.subf %374, %375 : vector<1x128xf32>
    %c3_275 = arith.constant 3 : index
    %c0_276 = arith.constant 0 : index
    %c0_277 = arith.constant 0 : index
    %377 = vector.load %arg12[%c3_275, %c0_276, %c0_277] : memref<4x1x128xf32, #tpu.memory_space<vmem>>, vector<1x1x128xf32>
    %378 = vector.shape_cast %377 : vector<1x1x128xf32> to vector<1x128xf32>
    %379 = vector.shape_cast %376 : vector<1x128xf32> to vector<1x1x128xf32>
    tpu.vector_store %arg12[%c3_275, %c0_276, %c0_277], %379 {strides = array<i32>} : memref<4x1x128xf32, #tpu.memory_space<vmem>>, vector<1x1x128xf32>,
    %c3_278 = arith.constant 3 : index
    %380 = memref.load %arg0[%c3_278] : memref<4xi32, #tpu.memory_space<smem>>
    %c9_i32 = arith.constant 9 : i32
    %381 = arith.addi %c9_i32, %380 : i32
    %382 = vector.broadcast %381 : i32 to vector<1x16xi32>
    %383 = arith.cmpi eq, %0, %382 : vector<1x16xi32>
    %384 = arith.extui %383 : vector<1x16xi1> to vector<1x16xi32>
    %385 = arith.sitofp %384 : vector<1x16xi32> to vector<1x16xf32>
    %386 = arith.addf %296, %385 : vector<1x16xf32>
    %387 = arith.truncf %386 : vector<1x16xf32> to vector<1x16xbf16>
    %388 = arith.truncf %351 : vector<1x16xf32> to vector<1x16xbf16>
    %c4 = arith.constant 4 : index
    %c0_279 = arith.constant 0 : index
    %c0_280 = arith.constant 0 : index
    %c0_281 = arith.constant 0 : index
    %389 = vector.load %arg3[%c4, %c0_279, %c0_280, %c0_281] : memref<5x3x16x16xbf16, #tpu.memory_space<vmem>>, vector<1x1x16x16xbf16>
    %390 = vector.shape_cast %389 : vector<1x1x16x16xbf16> to vector<16x16xbf16>
    %cst_282 = arith.constant dense<0.000000e+00> : vector<1x16xf32>
    %391 = tpu.matmul %387, %390, %cst_282 {dimension_numbers = #tpu.dot_dimension_numbers<[1], [0], [0], [1], [0, 0, 1, 1], [], []>} : vector<1x16xbf16>, vector<16x16xbf16>, vector<1x16xf32> -> vector<1x16xf32>
    %c4_283 = arith.constant 4 : index
    %c0_284 = arith.constant 0 : index
    %c0_285 = arith.constant 0 : index
    %c0_286 = arith.constant 0 : index
    %392 = vector.load %arg4[%c4_283, %c0_284, %c0_285, %c0_286] : memref<5x3x1x16xf32, #tpu.memory_space<vmem>>, vector<1x1x1x16xf32>
    %393 = vector.shape_cast %392 : vector<1x1x1x16xf32> to vector<1x16xf32>
    %394 = arith.addf %391, %393 : vector<1x16xf32>
    %c4_287 = arith.constant 4 : index
    %c0_288 = arith.constant 0 : index
    %c0_289 = arith.constant 0 : index
    %c0_290 = arith.constant 0 : index
    %395 = vector.load %arg2[%c4_287, %c0_288, %c0_289, %c0_290] : memref<5x3x16x16xbf16, #tpu.memory_space<vmem>>, vector<1x1x16x16xbf16>
    %396 = vector.shape_cast %395 : vector<1x1x16x16xbf16> to vector<16x16xbf16>
    %cst_291 = arith.constant dense<0.000000e+00> : vector<1x16xf32>
    %397 = tpu.matmul %388, %396, %cst_291 {dimension_numbers = #tpu.dot_dimension_numbers<[1], [0], [0], [1], [0, 0, 1, 1], [], []>} : vector<1x16xbf16>, vector<16x16xbf16>, vector<1x16xf32> -> vector<1x16xf32>
    %398 = arith.addf %394, %397 : vector<1x16xf32>
    %c4_292 = arith.constant 4 : index
    %c1_293 = arith.constant 1 : index
    %c0_294 = arith.constant 0 : index
    %c0_295 = arith.constant 0 : index
    %399 = vector.load %arg3[%c4_292, %c1_293, %c0_294, %c0_295] : memref<5x3x16x16xbf16, #tpu.memory_space<vmem>>, vector<1x1x16x16xbf16>
    %400 = vector.shape_cast %399 : vector<1x1x16x16xbf16> to vector<16x16xbf16>
    %cst_296 = arith.constant dense<0.000000e+00> : vector<1x16xf32>
    %401 = tpu.matmul %387, %400, %cst_296 {dimension_numbers = #tpu.dot_dimension_numbers<[1], [0], [0], [1], [0, 0, 1, 1], [], []>} : vector<1x16xbf16>, vector<16x16xbf16>, vector<1x16xf32> -> vector<1x16xf32>
    %c4_297 = arith.constant 4 : index
    %c1_298 = arith.constant 1 : index
    %c0_299 = arith.constant 0 : index
    %c0_300 = arith.constant 0 : index
    %402 = vector.load %arg4[%c4_297, %c1_298, %c0_299, %c0_300] : memref<5x3x1x16xf32, #tpu.memory_space<vmem>>, vector<1x1x1x16xf32>
    %403 = vector.shape_cast %402 : vector<1x1x1x16xf32> to vector<1x16xf32>
    %404 = arith.addf %401, %403 : vector<1x16xf32>
    %c4_301 = arith.constant 4 : index
    %c1_302 = arith.constant 1 : index
    %c0_303 = arith.constant 0 : index
    %c0_304 = arith.constant 0 : index
    %405 = vector.load %arg2[%c4_301, %c1_302, %c0_303, %c0_304] : memref<5x3x16x16xbf16, #tpu.memory_space<vmem>>, vector<1x1x16x16xbf16>
    %406 = vector.shape_cast %405 : vector<1x1x16x16xbf16> to vector<16x16xbf16>
    %cst_305 = arith.constant dense<0.000000e+00> : vector<1x16xf32>
    %407 = tpu.matmul %388, %406, %cst_305 {dimension_numbers = #tpu.dot_dimension_numbers<[1], [0], [0], [1], [0, 0, 1, 1], [], []>} : vector<1x16xbf16>, vector<16x16xbf16>, vector<1x16xf32> -> vector<1x16xf32>
    %408 = arith.addf %404, %407 : vector<1x16xf32>
    %c4_306 = arith.constant 4 : index
    %c2_307 = arith.constant 2 : index
    %c0_308 = arith.constant 0 : index
    %c0_309 = arith.constant 0 : index
    %409 = vector.load %arg3[%c4_306, %c2_307, %c0_308, %c0_309] : memref<5x3x16x16xbf16, #tpu.memory_space<vmem>>, vector<1x1x16x16xbf16>
    %410 = vector.shape_cast %409 : vector<1x1x16x16xbf16> to vector<16x16xbf16>
    %cst_310 = arith.constant dense<0.000000e+00> : vector<1x16xf32>
    %411 = tpu.matmul %387, %410, %cst_310 {dimension_numbers = #tpu.dot_dimension_numbers<[1], [0], [0], [1], [0, 0, 1, 1], [], []>} : vector<1x16xbf16>, vector<16x16xbf16>, vector<1x16xf32> -> vector<1x16xf32>
    %c4_311 = arith.constant 4 : index
    %c2_312 = arith.constant 2 : index
    %c0_313 = arith.constant 0 : index
    %c0_314 = arith.constant 0 : index
    %412 = vector.load %arg4[%c4_311, %c2_312, %c0_313, %c0_314] : memref<5x3x1x16xf32, #tpu.memory_space<vmem>>, vector<1x1x1x16xf32>
    %413 = vector.shape_cast %412 : vector<1x1x1x16xf32> to vector<1x16xf32>
    %414 = arith.addf %411, %413 : vector<1x16xf32>
    %c4_315 = arith.constant 4 : index
    %c2_316 = arith.constant 2 : index
    %c0_317 = arith.constant 0 : index
    %c0_318 = arith.constant 0 : index
    %415 = vector.load %arg2[%c4_315, %c2_316, %c0_317, %c0_318] : memref<5x3x16x16xbf16, #tpu.memory_space<vmem>>, vector<1x1x16x16xbf16>
    %416 = vector.shape_cast %415 : vector<1x1x16x16xbf16> to vector<16x16xbf16>
    %cst_319 = arith.constant dense<0.000000e+00> : vector<1x16xf32>
    %417 = tpu.matmul %388, %416, %cst_319 {dimension_numbers = #tpu.dot_dimension_numbers<[1], [0], [0], [1], [0, 0, 1, 1], [], []>} : vector<1x16xbf16>, vector<16x16xbf16>, vector<1x16xf32> -> vector<1x16xf32>
    %418 = arith.addf %414, %417 : vector<1x16xf32>
    %419 = arith.negf %418 : vector<1x16xf32>
    %420 = math.exp %419 : vector<1x16xf32>
    %cst_320 = arith.constant 1.000000e+00 : f32
    %421 = vector.broadcast %cst_320 : f32 to vector<1x16xf32>
    %422 = arith.addf %421, %420 : vector<1x16xf32>
    %423 = arith.divf %421, %422 : vector<1x16xf32>
    %424 = arith.negf %398 : vector<1x16xf32>
    %425 = math.exp %424 : vector<1x16xf32>
    %cst_321 = arith.constant 1.000000e+00 : f32
    %426 = vector.broadcast %cst_321 : f32 to vector<1x16xf32>
    %427 = arith.addf %426, %425 : vector<1x16xf32>
    %428 = arith.divf %426, %427 : vector<1x16xf32>
    %429 = math.tanh %408 : vector<1x16xf32>
    %430 = arith.mulf %428, %429 : vector<1x16xf32>
    %431 = math.tanh %430 : vector<1x16xf32>
    %432 = arith.mulf %423, %431 : vector<1x16xf32>
    %433 = arith.truncf %432 : vector<1x16xf32> to vector<1x16xbf16>
    %c4_322 = arith.constant 4 : index
    %c0_323 = arith.constant 0 : index
    %c0_324 = arith.constant 0 : index
    %434 = vector.load %arg7[%c4_322, %c0_323, %c0_324] : memref<5x16x16xbf16, #tpu.memory_space<vmem>>, vector<1x16x16xbf16>
    %435 = vector.shape_cast %434 : vector<1x16x16xbf16> to vector<16x16xbf16>
    %cst_325 = arith.constant dense<0.000000e+00> : vector<1x16xf32>
    %436 = tpu.matmul %433, %435, %cst_325 {dimension_numbers = #tpu.dot_dimension_numbers<[1], [0], [0], [1], [0, 0, 1, 1], [], []>} : vector<1x16xbf16>, vector<16x16xbf16>, vector<1x16xf32> -> vector<1x16xf32>
    %c4_326 = arith.constant 4 : index
    %c0_327 = arith.constant 0 : index
    %c0_328 = arith.constant 0 : index
    %437 = vector.load %arg9[%c4_326, %c0_327, %c0_328] : memref<5x1x16xf32, #tpu.memory_space<vmem>>, vector<1x1x16xf32>
    %438 = vector.shape_cast %437 : vector<1x1x16xf32> to vector<1x16xf32>
    %439 = arith.addf %436, %438 : vector<1x16xf32>
    %c0_329 = arith.constant 0 : index
    %c0_330 = arith.constant 0 : index
    %440 = vector.load %arg13[%c0_329, %c0_330] : memref<1x16xf32, #tpu.memory_space<vmem>>, vector<1x16xf32>
    tpu.vector_store %arg13[%c0_329, %c0_330], %439 {strides = array<i32>} : memref<1x16xf32, #tpu.memory_space<vmem>>, vector<1x16xf32>,
    return
  }
}

</mosaic_0001>

<bundles_post_ra>
// kernel: fwd.1
= control target key start
LH: loop header
LB: loop body
LE: loop exit
PB: predicated region body
PF: predicated region fallthrough
CT: control target
= control target key end

     0   :  { %19 = vsyncpa [#allocation5], 0  ;;  %s2445_s0 = inlined_call_operand.vmem [shape: s32[4], index: 0, kind: input, shape index: {}]   ;;  %s2446_s1 = inlined_call_operand.vmem [shape: f32[1,16], index: 1, kind: input, shape index: {}]   ;;  %s2447_s2 = inlined_call_operand.hbm [shape: bf16[5,3,16,16], index: 2, kind: input, shape index: {}]   ;;  %s2448_s3 = inlined_call_operand.hbm [shape: bf16[5,3,16,16], index: 3, kind: input, shape index: {}]   ;;  %s2449_s4 = inlined_call_operand.hbm [shape: f32[5,3,1,16], index: 4, kind: input, shape index: {}]   ;;  %s2450_s5 = inlined_call_operand.hbm [shape: bf16[3,16,16], index: 5, kind: input, shape index: {}]   ;;  %s2451_s6 = inlined_call_operand.hbm [shape: f32[3,1,16], index: 6, kind: input, shape index: {}]   ;;  %s2452_s7 = inlined_call_operand.hbm [shape: bf16[5,16,16], index: 7, kind: input, shape index: {}]   ;;  %s2453_s8 = inlined_call_operand.vmem [shape: bf16[16,16], index: 8, kind: input, shape index: {}]   ;;  %s2454_s9 = inlined_call_operand.vmem [shape: f32[5,1,16], index: 9, kind: input, shape index: {}]   ;;  %s2455_s10 = inlined_call_operand.hbm [shape: bf16[4,16,128], index: 10, kind: input, shape index: {}]   ;;  %s2456_s11 = inlined_call_operand.hbm [shape: f32[4,1,128], index: 11, kind: input, shape index: {}]   ;;  %s2457_s12 = inlined_call_operand.vmem [shape: f32[4,1,128], index: 12, kind: output, shape index: {0}]   ;;  %s2458_s13 = inlined_call_operand.hbm [shape: f32[1,16], index: 13, kind: output, shape index: {1}]  }
   0x1   :  { %20 = vsyncpa [#allocation3], 0 }
   0x2   :  { %21 = vsyncpa [#allocation8], 0 }
   0x3   :  { %22 = vsyncpa [#allocation11], 0 }
   0x4   :  { %23 = vsyncpa [#allocation14], 0 }
   0x5   :  { %24 = vsyncpa [#allocation17], 0 }
   0x6   :  { %25 = vsyncpa [#allocation4], 0  ;;  %s54_s27 = sshll.u32 %s2448_s3, 4  ;;  %s2174_s28 = smov [#allocation7]   ;;  %s55_s27 = int_to_ptr.hbm [resolvable:$true] %s54_s27 }
   0x7   :  { %s56_s29 = sshll.u32 %s2174_s28, 4  ;;  %s80_s15 = sshll.u32 %s2450_s5, 4  ;;  %s57_s29 = int_to_ptr.vmem [resolvable:$true] %s56_s29  ;;  %s81_s15 = int_to_ptr.hbm [resolvable:$true] %s80_s15 }
   0x8   :  { %s2175_s16 = smov 64   ;;  %s2176_s17 = smov 4  }
   0x9   :  { %62 = dma.hbm_to_vmem [thread:$0]  %s55_s27, 1920, %s57_s29, [#allocation8], %s2175_s16, %s2175_s16, %s2176_s17  }
   0xa   :  { %s2177_s18 = smov [#allocation10]   ;;  %s106_s3 = sshll.u32 %s2452_s7, 4  ;;  %s107_s3 = int_to_ptr.hbm [resolvable:$true] %s106_s3 }
   0xb   :  { %s82_s19 = sshll.u32 %s2177_s18, 4  ;;  %s31_s23 = sshll.u32 %s2445_s0, 4  ;;  %s83_s19 = int_to_ptr.vmem [resolvable:$true] %s82_s19  ;;  %s32_s23 = int_to_ptr.vmem [resolvable:$true] %s31_s23 }
   0xc   :  { %88 = dma.hbm_to_vmem [thread:$0]  %s81_s15, 384, %s83_s19, [#allocation11], %s2175_s16, %s2175_s16, %s2176_s17  }
   0xd   :  { %s2178_s24 = smov [#allocation13]   ;;  %s2179_s26 = smov [#allocation2]  }
   0xe   :  { %s108_s25 = sshll.u32 %s2178_s24, 4  ;;  %s41_s28 = sshll.u32 %s2447_s2, 4  ;;  %s109_s25 = int_to_ptr.vmem [resolvable:$true] %s108_s25  ;;  %s42_s28 = int_to_ptr.hbm [resolvable:$true] %s41_s28 }
   0xf   :  { %114 = dma.hbm_to_vmem [thread:$0]  %s107_s3, 640, %s109_s25, [#allocation14], %s2175_s16, %s2175_s16, %s2176_s17  }
  0x10   :  { %34 = dma.vmem_to_smem %s32_s23, 16, %s2179_s26, [#allocation5]  }
  0x11   :  { %s2180_s29 = smov [#allocation6]   ;;  %s67_s15 = sshll.u32 %s2449_s4, 4  ;;  %s68_s15 = int_to_ptr.hbm [resolvable:$true] %s67_s15 }
  0x12   :  { %s43_s30 = sshll.u32 %s2180_s29, 4  ;;  %s2181_s18 = smov [#allocation9]   ;;  %s44_s30 = int_to_ptr.vmem [resolvable:$true] %s43_s30 }
  0x13   :  { %49 = dma.hbm_to_vmem [thread:$0]  %s42_s28, 1920, %s44_s30, [#allocation3], %s2175_s16, %s2175_s16, %s2176_s17  }
  0x14   :  { %s69_s19 = sshll.u32 %s2181_s18, 4  ;;  %s2182_s20 = smov 16   ;;  %s70_s19 = int_to_ptr.vmem [resolvable:$true] %s69_s19 }
  0x15   :  { %s2183_s21 = smov 1   ;;  %s93_s5 = sshll.u32 %s2451_s6, 4  ;;  %s94_s5 = int_to_ptr.hbm [resolvable:$true] %s93_s5 }
  0x16   :  { %75 = dma.hbm_to_vmem [thread:$0]  %s68_s15, 240, %s70_s19, [#allocation8], %s2182_s20, %s2182_s20, %s2183_s21  }
  0x17   :  { %s2184_s22 = smov [#allocation12]   ;;  %s123_s25 = sshll.u32 %s2455_s10, 4  ;;  %s124_s25 = int_to_ptr.hbm [resolvable:$true] %s123_s25 }
  0x18   :  { %s95_s23 = sshll.u32 %s2184_s22, 4  ;;  %s2185_s26 = smov [#allocation15]   ;;  %s96_s23 = int_to_ptr.vmem [resolvable:$true] %s95_s23 }
  0x19   :  { %101 = dma.hbm_to_vmem [thread:$0]  %s94_s5, 48, %s96_s23, [#allocation11], %s2182_s20, %s2182_s20, %s2183_s21  }
  0x1a   :  { %s125_s7 = sshll.u32 %s2185_s26, 4  ;;  %s136_s29 = sshll.u32 %s2456_s11, 4  ;;  %s126_s7 = int_to_ptr.vmem [resolvable:$true] %s125_s7  ;;  %s137_s29 = int_to_ptr.hbm [resolvable:$true] %s136_s29 }
  0x1b   :  { %131 = dma.hbm_to_vmem [thread:$0]  %s124_s25, 512, %s126_s7, [#allocation14], %s2175_s16, %s2175_s16, %s2176_s17  }
  0x1c   :  { %s2186_s6 = smov [#allocation16]  }
  0x1d   :  { %s138_s30 = sshll.u32 %s2186_s6, 4  ;;  %s139_s30 = int_to_ptr.vmem [resolvable:$true] %s138_s30 }
  0x1e   :  { %144 = dma.hbm_to_vmem [thread:$0]  %s137_s29, 64, %s139_s30, [#allocation17], %s2182_s20, %s2182_s20, %s2183_s21  }
  0x1f   :  { %2160 = dma.done.wait [#allocation5], 16  }
  0x20   :  { %2161 = vsyncadd [#allocation5], 4294967280 }
  0x21   :  { %2162 = dma.done.wait [#allocation3], 1920  }
  0x22   :  { %2163 = vsyncadd [#allocation3], 4294965376 }
  0x23   :  { %2164 = dma.done.wait [#allocation8], 2160  }
  0x24   :  { %2165 = vsyncadd [#allocation8], 4294965136 }
  0x25   :  { %2166 = dma.done.wait [#allocation11], 432  }
  0x26   :  { %2167 = vsyncadd [#allocation11], 4294966864 }
  0x27   :  { %2168 = dma.done.wait [#allocation14], 1152  }
  0x28   :  { %2169 = vsyncadd [#allocation14], 4294966144 }
  0x29   :  { %2170 = dma.done.wait [#allocation17], 64  }
  0x2a   :  { %2171 = vsyncadd [#allocation17], 4294967232 }
  0x2b   :  { %181 = sfence }
  0x2c   :  { %v1789_v0 = vld [vmem:[#allocation7] sm:$0xff]  ;;  %v1791_v1 = vld [vmem:[#allocation7 + $0x10] sm:$0xff]  ;;  %v185_v2 = vld [vmem:[%s2446_s1] sm:$0x1]  ;;  %vm196_vm0 = vcmask 130048   ;;  %s1657_s0 = sld [smem:[#allocation2 + $0x1]] }
  0x2d   :  { %v186_v3 = vpack.c.bf16 %v185_v2, %v185_v2  ;;  %v1793_v4 = vld [vmem:[#allocation10] sm:$0xff]  ;;  %v1795_v5 = vld [vmem:[#allocation10 + $0x10] sm:$0xff]  ;;  %207 = vmatpush.bf16.msra.mxu0 %v1789_v0  ;;  %255 = vmatpush.bf16.msra.mxu2 %v1791_v1  ;;  %v1794_v7 = vld [vmem:[#allocation10 + $0x8] sm:$0xff]  ;;  %s1703_s2 = sld [smem:[#allocation2 + $0x2]]  ;;  %s2188_s30 = smov [#allocation18]  }
  0x2e   :  { %v1790_v6 = vld [vmem:[#allocation7 + $0x8] sm:$0xff]  ;;  %v189_v8 = vld [vmem:[#allocation9] sm:$0x1]  ;;  %v241_v13 = vld [vmem:[#allocation9 + $0x2] sm:$0x1]  ;;  %s1749_s24 = sld [smem:[#allocation2 + $0x3]] }
  0x2f   :  { %231 = vmatpush.bf16.msra.mxu1 %v1790_v6  ;;  %v1792_v17 = vld [vmem:[#allocation13] sm:$0xff]  ;;  %v331_v23 = vld [vmem:[#allocation12] sm:$0x1]  ;;  %v217_v24 = vld [vmem:[#allocation9 + $0x1] sm:$0x1]  ;;  %s1544_s10 = sshll.u32 %s2188_s30, 4  ;;  %s1545_s10 = int_to_ptr.vmem [resolvable:$true] %s1544_s10 }
  0x30   :  { %1567 = vmatmul.msk.bf16.vlgmr.msra.gmra.mxu0 %vm196_vm0, %v186_v3  ;;  %1577 = vmatmul.msk.bf16.vlgmr.msra.gmra.mxu2 %vm196_vm0, %v186_v3  ;;  %v1796_v28 = vld [vmem:[%s2453_s8] sm:$0xff]  ;;  %v379_v34 = vld [vmem:[#allocation12 + $0x2] sm:$0x1]  ;;  %v355_v57 = vld [vmem:[#allocation12 + $0x1] sm:$0x1]  ;;  %s511_s8 = sld [smem:[#allocation2]] }
  0x31   :  { %345 = vmatpush.bf16.msrb.mxu0 %v1793_v4  ;;  %393 = vmatpush.bf16.msrb.mxu2 %v1795_v5  ;;  %s1546_s16 = sshll.u32 %s2458_s13, 4  ;;  %s1547_s16 = int_to_ptr.hbm [resolvable:$true] %s1546_s16 }
  0x32   :  { %1572 = vmatmul.msk.bf16.vlgmr.msra.gmra.mxu1 %vm196_vm0, %v186_v3  ;;  %323 = vmatpush.bf16.msra.mxu3 %v1792_v17  ;;  %s779_s15 = sadd.s32 4, %s1657_s0 }
  0x33   :  { %369 = vmatpush.bf16.msrb.mxu1 %v1794_v7  ;;  %s1047_s3 = sadd.s32 7, %s1703_s2 }
  0x34   :  { %s1314_s25 = sadd.s32 9, %s1749_s24 }
  0x36   :  { %460 = vmatpush.bf16.msrb.mxu3 %v1796_v28 }
  0x40   :  { %1589 = vmatmul.msk.bf16.vlgmr.msrb.gmra.mxu0 %vm196_vm0, %v186_v3  ;;  %1599 = vmatmul.msk.bf16.vlgmr.msrb.gmra.mxu2 %vm196_vm0, %v186_v3 }
  0x42   :  { %1594 = vmatmul.msk.bf16.vlgmr.msrb.gmra.mxu1 %vm196_vm0, %v186_v3 }
  0xad   :  { %v209_v9 = vpop.f32.mrf.mxu0 }
  0xae   :  { %v210_v10 = vadd.f32 %v209_v9, %v189_v8 }
  0xaf   :  { %v233_v11 = vpop.f32.mrf.mxu1 }
  0xb0   :  { %v1579_v12 = vmul.f32 -1.442695, %v210_v10  ;;  %v234_v30 = vadd.f32 %v233_v11, %v217_v24 }
  0xb2   :  { %1844 = vpow2.f32 %v1579_v12 }
  0xb3   :  { %v257_v14 = vpop.f32.mrf.mxu2 }
  0xb4   :  { %v258_v15 = vadd.f32 %v257_v14, %v241_v13 }
  0xb5   :  { %v211_v16 = vpop.f32.mrf.mxu0 }
  0xb6   :  { %v1578_v18 = vmul.f32 -1.442695, %v258_v15 }
  0xb7   :  { %v235_v19 = vpop.f32.mrf.mxu1 }
  0xb8   :  { %v1845_v20 = vpop.eup %1844  ;;  %1846 = vpow2.f32 %v1578_v18 }
  0xb9   :  { %v283_v21 = vadd.f32 1.0, %v1845_v20 }
  0xbb   :  { %1848 = vrcp.f32 %v283_v21  ;;  %v259_v22 = vpop.f32.mrf.mxu2  ;;  %v295_v39 = vand.u32 2147483648, %v283_v21  ;;  %v293_v42 = vand.u32 2147483647, %v283_v21  ;;  %vm289_vm2 = vweird.f32 %v283_v21 }
  0xbd   :  { %v347_v25 = vpop.f32.mrf.mxu0  ;;  %v296_v50 = vor.u32 1.1754944e-38, %v295_v39  ;;  %vm294_vm4 = vcmp.eq.f32.partialorder %v293_v42, 8.507059e+37  ;;  %v1802_v42 = vld [vmem:[#allocation7 + $0x28] sm:$0xff] }
  0xbe   :  { %v1847_v26 = vpop.eup %1846  ;;  %v348_v27 = vadd.f32 %v347_v25, %v331_v23 }
  0xbf   :  { %v264_v29 = vadd.f32 1.0, %v1847_v26  ;;  %v371_v31 = vpop.f32.mrf.mxu1 }
  0xc0   :  { %v1601_v32 = vmul.f32 -1.442695, %v348_v27  ;;  %v372_v63 = vadd.f32 %v371_v31, %v355_v57 }
  0xc1   :  { %v1849_v33 = vpop.eup %1848  ;;  %1850 = vrcp.f32 %v264_v29  ;;  %v276_v61 = vand.u32 2147483648, %v264_v29  ;;  %vm270_vm6 = vweird.f32 %v264_v29  ;;  %v274_v0 = vand.u32 2147483647, %v264_v29 }
  0xc2   :  { %v285_v35 = vmul.f32 %v1849_v33, %v283_v21  ;;  %1852 = vpow2.f32 %v1601_v32  ;;  %vm290_vm1 = vweird.f32 %v1849_v33  ;;  %v1799_v32 = vld [vmem:[#allocation6 + $0x18] sm:$0xff] }
  0xc3   :  { %1854 = vtanh.f32 %v234_v30  ;;  %v395_v36 = vpop.f32.mrf.mxu2  ;;  %vm291_vm3 = vmor %vm289_vm2, %vm290_vm1  ;;  %v277_v4 = vor.u32 1.1754944e-38, %v276_v61  ;;  %vm275_vm8 = vcmp.eq.f32.partialorder %v274_v0, 8.507059e+37  ;;  %561 = vmatpush.bf16.msra.mxu2 %v1799_v32  ;;  %v522_v61 = vld [vmem:[#allocation9 + $0x3] sm:$0x1] }
  0xc4   :  { %v286_v37 = vsub.f32 1.0, %v285_v35  ;;  %v396_v38 = vadd.f32 %v395_v36, %v379_v34  ;;  %v183_v34 = vlaneseq  ;;  %v512_v36 = vstv %s511_s8 }
  0xc5   :  { %v349_v40 = vpop.f32.mrf.mxu0 }
  0xc6   :  { %v287_v41 = vmul.f32 %v1849_v33, %v286_v37  ;;  %v1600_v43 = vmul.f32 -1.442695, %v396_v38  ;;  %v2315_v35 = vand.u32 127, %v183_v34  ;;  %v2187_v37 = vmov 0.0   ;;  %v1797_v40 = vld [vmem:[#allocation15] sm:$0xff] }
  0xc7   :  { %v1851_v44 = vpop.eup %1850  ;;  %v373_v45 = vpop.f32.mrf.mxu1  ;;  %488 = vmatpush.bf16.msra.mxu0 %v1797_v40 }
  0xc8   :  { %v1853_v46 = vpop.eup %1852  ;;  %v266_v47 = vmul.f32 %v1851_v44, %v264_v29  ;;  %v288_v48 = vadd.f32 %v1849_v33, %v287_v41  ;;  %1856 = vpow2.f32 %v1600_v43  ;;  %vm271_vm5 = vweird.f32 %v1851_v44  ;;  %v1803_v41 = vld [vmem:[#allocation6 + $0x28] sm:$0xff]  ;;  %v1800_v43 = vld [vmem:[#allocation7 + $0x20] sm:$0xff] }
  0xc9   :  { %v1855_v49 = vpop.eup %1854  ;;  %v421_v51 = vadd.f32 1.0, %v1853_v46  ;;  %vm272_vm7 = vmor %vm270_vm6, %vm271_vm5  ;;  %vm513_vm2 = vcmp.eq.s32.totalorder %v2315_v35, %v512_v36  ;;  %655 = vmatpush.bf16.msrb.mxu2 %v1803_v41 }
  0xca   :  { %v292_v52 = vsel %vm291_vm3, %v1849_v33, %v288_v48  ;;  %v267_v53 = vsub.f32 1.0, %v266_v47  ;;  %v1798_v33 = vld [vmem:[#allocation7 + $0x18] sm:$0xff]  ;;  %v2319_v38 = vsel %vm513_vm2, 1.0, %v2187_v37  ;;  %v306_v47 = vld [vmem:[%s2454_s9] sm:$0x1]  ;;  %vm494_vm3 = vcmp.lt.s32.totalorder %v2315_v35, 4 }
  0xcb   :  { %v297_v54 = vsel %vm294_vm4, %v296_v50, %v292_v52  ;;  %1858 = vrcp.f32 %v421_v51  ;;  %v397_v55 = vpop.f32.mrf.mxu2  ;;  %v433_v8 = vand.u32 2147483648, %v421_v51  ;;  %v431_v11 = vand.u32 2147483647, %v421_v51  ;;  %539 = vmatpush.bf16.msra.mxu1 %v1798_v33 }
  0xcc   :  { %v300_v56 = vmul.f32 %v1855_v49, %v297_v54  ;;  %v268_v58 = vmul.f32 %v1851_v44, %v267_v53  ;;  %vm427_vm10 = vweird.f32 %v421_v51  ;;  %v517_v39 = vpack.c.bf16 %v2319_v38, %v2319_v38 }
  0xcd   :  { %v434_v17 = vor.u32 1.1754944e-38, %v433_v8  ;;  %vm432_vm12 = vcmp.eq.f32.partialorder %v431_v11, 8.507059e+37  ;;  %vm496_vm4 = vcmask 1040384   ;;  %v1804_v8 = vld [vmem:[#allocation13 + $0x8] sm:$0xff] }
  0xce   :  { %v1857_v59 = vpop.eup %1856  ;;  %1860 = vtanh.f32 %v300_v56  ;;  %v269_v60 = vadd.f32 %v1851_v44, %v268_v58  ;;  %1617 = vmatmul.msk.bf16.vlgmr.msra.gmra.mxu1 %vm196_vm0, %v517_v39 }
  0xcf   :  { %v402_v62 = vadd.f32 1.0, %v1857_v59  ;;  %633 = vmatpush.bf16.msrb.mxu1 %v1802_v42 }
  0xd0   :  { %v273_v2 = vsel %vm272_vm7, %v1851_v44, %v269_v60  ;;  %v1801_v44 = vld [vmem:[#allocation6 + $0x20] sm:$0xff] }
  0xd1   :  { %v1859_v1 = vpop.eup %1858  ;;  %1862 = vrcp.f32 %v402_v62  ;;  %v278_v7 = vsel %vm275_vm8, %v277_v4, %v273_v2  ;;  %v414_v24 = vand.u32 2147483648, %v402_v62  ;;  %vm408_vm14 = vweird.f32 %v402_v62  ;;  %608 = vmatpush.bf16.msrb.mxu0 %v1801_v44  ;;  %v471_v60 = vld [vmem:[#allocation16] sm:$0x1] }
  0xd2   :  { %v423_v3 = vmul.f32 %v1859_v1, %v421_v51  ;;  %1864 = vtanh.f32 %v372_v63  ;;  %vm428_vm9 = vweird.f32 %v1859_v1  ;;  %v412_v25 = vand.u32 2147483647, %v402_v62 }
  0xd3   :  { %vm429_vm11 = vmor %vm427_vm10, %vm428_vm9  ;;  %v415_v27 = vor.u32 1.1754944e-38, %v414_v24 }
  0xd4   :  { %v1861_v5 = vpop.eup %1860  ;;  %v424_v6 = vsub.f32 1.0, %v423_v3  ;;  %vm413_vm1 = vcmp.eq.f32.partialorder %v412_v25, 8.507059e+37 }
  0xd5   :  { %v302_v9 = vmul.f32 %v1861_v5, %v278_v7 }
  0xd6   :  { %v425_v10 = vmul.f32 %v1859_v1, %v424_v6 }
  0xd7   :  { %v1863_v12 = vpop.eup %1862  ;;  %v303_v13 = vpack.c.bf16 %v302_v9, %v302_v9  ;;  %v619_v9 = vld [vmem:[#allocation9 + $0x5] sm:$0x1] }
  0xd8   :  { %v404_v14 = vmul.f32 %v1863_v12, %v402_v62  ;;  %v426_v15 = vadd.f32 %v1859_v1, %v425_v10  ;;  %v1865_v16 = vpop.eup %1864  ;;  %vm409_vm13 = vweird.f32 %v1863_v12 }
  0xd9   :  { %1584 = vmatmul.msk.bf16.vlgmr.msra.gmra.mxu3 %vm196_vm0, %v303_v13  ;;  %vm410_vm15 = vmor %vm408_vm14, %vm409_vm13  ;;  %vm761_vm14 = vcmp.lt.s32.totalorder %v2315_v35, 3 }
  0xda   :  { %v405_v18 = vsub.f32 1.0, %v404_v14  ;;  %v430_v19 = vsel %vm429_vm11, %v1859_v1, %v426_v15  ;;  %586 = vmatpush.bf16.msra.mxu3 %v1800_v43 }
  0xdb   :  { %v435_v20 = vsel %vm432_vm12, %v434_v17, %v430_v19 }
  0xdc   :  { %v438_v21 = vmul.f32 %v1865_v16, %v435_v20  ;;  %v406_v22 = vmul.f32 %v1863_v12, %v405_v18  ;;  %v572_v16 = vld [vmem:[#allocation9 + $0x4] sm:$0x1] }
  0xde   :  { %1866 = vtanh.f32 %v438_v21  ;;  %v407_v23 = vadd.f32 %v1863_v12, %v406_v22  ;;  %1637 = vmatmul.msk.bf16.vlgmr.msrb.gmra.mxu1 %vm196_vm0, %v517_v39 }
  0xe0   :  { %v411_v26 = vsel %vm410_vm15, %v1863_v12, %v407_v23 }
  0xe1   :  { %v416_v29 = vsel %vm413_vm1, %v415_v27, %v411_v26 }
  0xe4   :  { %v1867_v28 = vpop.eup %1866 }
  0xe5   :  { %v440_v30 = vmul.f32 %v1867_v28, %v416_v29 }
  0xe7   :  { %v441_v31 = vpack.c.bf16 %v440_v30, %v440_v30 }
  0xe9   :  { %1606 = vmatmul.msk.bf16.vlgmr.msrb.gmra.mxu3 %vm196_vm0, %v441_v31 }
  0xea   :  { %726 = vmatpush.bf16.msrb.mxu3 %v1804_v8 }
  0xf9   :  { %1627 = vmatmul.msk.bf16.vlgmr.msra.gmra.mxu3 %vm196_vm0, %v517_v39 }
 0x14b   :  { %v541_v54 = vpop.f32.mrf.mxu1 }
 0x14c   :  { %v542_v0 = vadd.f32 %v541_v54, %v522_v61 }
 0x153   :  { %v543_v55 = vpop.f32.mrf.mxu1 }
 0x15b   :  { %v635_v56 = vpop.f32.mrf.mxu1 }
 0x15c   :  { %v325_v45 = vpop.f32.mrf.mxu3  ;;  %v636_v13 = vadd.f32 %v635_v56, %v619_v9 }
 0x15d   :  { %v326_v48 = vadd.f32 %v325_v45, %v306_v47 }
 0x163   :  { %v637_v58 = vpop.f32.mrf.mxu1 }
 0x164   :  { %v327_v46 = vpop.f32.mrf.mxu3 }
 0x16c   :  { %v462_v49 = vpop.f32.mrf.mxu3 }
 0x16d   :  { %v466_v50 = vadd.f32 %v462_v49, %v326_v48 }
 0x16f   :  { %v467_v51 = vmax.f32 %v466_v50, 0.0 }
 0x171   :  { %v468_v52 = vpack.c.bf16 %v467_v51, %v467_v51 }
 0x173   :  { %1611 = vmatmul.msk.bf16.vlgmr.msra.gmra.mxu0 %vm196_vm0, %v468_v52  ;;  %1622 = vmatmul.msk.bf16.vlgmr.msra.gmra.mxu2 %vm196_vm0, %v468_v52 }
 0x174   :  { %v464_v53 = vpop.f32.mrf.mxu3 }
 0x175   :  { %v1806_v53 = vld [vmem:[#allocation7 + $0x30] sm:$0xff] }
 0x176   :  { %807 = vmatpush.bf16.msra.mxu1 %v1806_v53 }
 0x17c   :  { %v588_v57 = vpop.f32.mrf.mxu3 }
 0x17d   :  { %v589_v21 = vadd.f32 %v588_v57, %v572_v16 }
 0x183   :  { %1632 = vmatmul.msk.bf16.vlgmr.msrb.gmra.mxu0 %vm196_vm0, %v468_v52  ;;  %1642 = vmatmul.msk.bf16.vlgmr.msrb.gmra.mxu2 %vm196_vm0, %v468_v52  ;;  %v1807_v52 = vld [vmem:[#allocation6 + $0x30] sm:$0xff] }
 0x184   :  { %v590_v59 = vpop.f32.mrf.mxu3  ;;  %829 = vmatpush.bf16.msra.mxu2 %v1807_v52 }
 0x1f0   :  { %v490_v62 = vpop.f32.mrf.mxu0 }
 0x1f1   :  { %v491_v63 = vadd.f32 %v490_v62, %v471_v60  ;;  %v780_v60 = vstv %s779_s15 }
 0x1f2   :  { %vm781_vm13 = vcmp.eq.s32.totalorder %v2315_v35, %v780_v60 }
 0x1f3   :  { %v2336_v1 = vsel %vm494_vm3, %v491_v63, -1e+30  ;;  %v1658_v61 = vsel %vm781_vm13, 1.0, %v2187_v37 }
 0x1f4   :  { %v497_v2 = vsel %vm496_vm4, %v2336_v1, -inf  ;;  %v2348_v62 = vadd.f32 %v1658_v61, %v2319_v38  ;;  %v1645_v38 = vld [vmem:[%s2454_s9 + $0x1] sm:$0x1] }
 0x1f5   :  { %498 = vmax.xlane.f32.xlu0 %v497_v2  ;;  %v1810_v2 = vld [vmem:[#allocation7 + $0x40] sm:$0xff] }
 0x1f6   :  { %v563_v3 = vpop.f32.mrf.mxu2  ;;  %v785_v63 = vpack.c.bf16 %v2348_v62, %v2348_v62  ;;  %901 = vmatpush.bf16.msrb.mxu1 %v1810_v2 }
 0x1f7   :  { %v567_v4 = vadd.f32 %v563_v3, %v542_v0  ;;  %v1805_v0 = vld [vmem:[#allocation15 + $0x8] sm:$0xff] }
 0x1f8   :  { %v492_v5 = vpop.f32.mrf.mxu0  ;;  %1663 = vmatmul.msk.bf16.vlgmr.msra.gmra.mxu1 %vm196_vm0, %v785_v63  ;;  %755 = vmatpush.bf16.msra.mxu0 %v1805_v0  ;;  %v1808_v3 = vld [vmem:[#allocation7 + $0x38] sm:$0xff] }
 0x1f9   :  { %v1644_v6 = vmul.f32 -1.442695, %v567_v4  ;;  %v1809_v4 = vld [vmem:[#allocation6 + $0x38] sm:$0xff]  ;;  %854 = vmatpush.bf16.msra.mxu3 %v1808_v3 }
 0x1fb   :  { %1868 = vpow2.f32 %v1644_v6 }
 0x1fc   :  { %876 = vmatpush.bf16.msrb.mxu0 %v1809_v4 }
 0x1fe   :  { %v565_v7 = vpop.f32.mrf.mxu2 }
 0x200   :  { %v610_v10 = vpop.f32.mrf.mxu0 }
 0x201   :  { %v1869_v11 = vpop.eup %1868  ;;  %v614_v24 = vadd.f32 %v610_v10, %v589_v21  ;;  %v790_v21 = vld [vmem:[#allocation9 + $0x6] sm:$0x1] }
 0x202   :  { %v684_v12 = vadd.f32 1.0, %v1869_v11 }
 0x204   :  { %1870 = vrcp.f32 %v684_v12  ;;  %v696_v28 = vand.u32 2147483648, %v684_v12  ;;  %vm690_vm6 = vweird.f32 %v684_v12  ;;  %v694_v29 = vand.u32 2147483647, %v684_v12 }
 0x206   :  { %v657_v14 = vpop.f32.mrf.mxu2  ;;  %v697_v32 = vor.u32 1.1754944e-38, %v696_v28  ;;  %vm695_vm8 = vcmp.eq.f32.partialorder %v694_v29, 8.507059e+37 }
 0x207   :  { %v661_v15 = vadd.f32 %v657_v14, %v636_v13 }
 0x208   :  { %v612_v17 = vpop.f32.mrf.mxu0  ;;  %1683 = vmatmul.msk.bf16.vlgmr.msrb.gmra.mxu1 %vm196_vm0, %v785_v63 }
 0x209   :  { %v1643_v18 = vmul.f32 -1.442695, %v661_v15 }
 0x20a   :  { %v1871_v19 = vpop.eup %1870 }
 0x20b   :  { %v686_v20 = vmul.f32 %v1871_v19, %v684_v12  ;;  %1872 = vpow2.f32 %v1643_v18  ;;  %vm691_vm5 = vweird.f32 %v1871_v19 }
 0x20c   :  { %vm692_vm7 = vmor %vm690_vm6, %vm691_vm5  ;;  %1874 = vtanh.f32 %v614_v24 }
 0x20d   :  { %v687_v22 = vsub.f32 1.0, %v686_v20  ;;  %v738_v20 = vld [vmem:[#allocation16 + $0x1] sm:$0x1] }
 0x20e   :  { %v659_v23 = vpop.f32.mrf.mxu2 }
 0x20f   :  { %v688_v25 = vmul.f32 %v1871_v19, %v687_v22 }
 0x211   :  { %v1873_v26 = vpop.eup %1872  ;;  %v689_v27 = vadd.f32 %v1871_v19, %v688_v25 }
 0x212   :  { %v665_v30 = vadd.f32 1.0, %v1873_v26  ;;  %v1875_v34 = vpop.eup %1874 }
 0x213   :  { %v693_v31 = vsel %vm692_vm7, %v1871_v19, %v689_v27 }
 0x214   :  { %1876 = vrcp.f32 %v665_v30  ;;  %v698_v33 = vsel %vm695_vm8, %v697_v32, %v693_v31  ;;  %v677_v42 = vand.u32 2147483648, %v665_v30  ;;  %v675_v44 = vand.u32 2147483647, %v665_v30  ;;  %v1812_v32 = vld [vmem:[#allocation13 + $0x10] sm:$0xff] }
 0x215   :  { %v701_v39 = vmul.f32 %v1875_v34, %v698_v33  ;;  %vm671_vm10 = vweird.f32 %v665_v30  ;;  %v887_v33 = vld [vmem:[#allocation9 + $0x8] sm:$0x1] }
 0x216   :  { %v678_v46 = vor.u32 1.1754944e-38, %v677_v42  ;;  %vm676_vm12 = vcmp.eq.f32.partialorder %v675_v44, 8.507059e+37 }
 0x217   :  { %1878 = vtanh.f32 %v701_v39 }
 0x21a   :  { %v1877_v36 = vpop.eup %1876 }
 0x21b   :  { %v667_v40 = vmul.f32 %v1877_v36, %v665_v30  ;;  %vm672_vm9 = vweird.f32 %v1877_v36 }
 0x21c   :  { %vm673_vm11 = vmor %vm671_vm10, %vm672_vm9  ;;  %vm1029_vm10 = vcmp.lt.s32.totalorder %v2315_v35, 2 }
 0x21d   :  { %v668_v41 = vsub.f32 1.0, %v667_v40  ;;  %v1879_v48 = vpop.eup %1878 }
 0x21f   :  { %v669_v43 = vmul.f32 %v1877_v36, %v668_v41 }
 0x221   :  { %v670_v45 = vadd.f32 %v1877_v36, %v669_v43  ;;  %v840_v43 = vld [vmem:[#allocation9 + $0x7] sm:$0x1] }
 0x223   :  { %v674_v47 = vsel %vm673_vm11, %v1877_v36, %v670_v45 }
 0x224   :  { %v679_v49 = vsel %vm676_vm12, %v678_v46, %v674_v47 }
 0x225   :  { %v703_v50 = vmul.f32 %v1879_v48, %v679_v49 }
 0x227   :  { %v704_v51 = vpack.c.bf16 %v703_v50, %v703_v50 }
 0x229   :  { %1650 = vmatmul.msk.bf16.vlgmr.msrb.gmra.mxu3 %vm196_vm0, %v704_v51 }
 0x22a   :  { %994 = vmatpush.bf16.msrb.mxu3 %v1812_v32 }
 0x239   :  { %1673 = vmatmul.msk.bf16.vlgmr.msra.gmra.mxu3 %vm196_vm0, %v785_v63 }
 0x268   :  { %v499_v54 = vpop.xlane.xlu0 %498 }
 0x269   :  { %v500_v55 = vsub.f32 %v2336_v1, %v499_v54  ;;  %v1811_v1 = vld [vmem:[#allocation6 + $0x40] sm:$0xff] }
 0x26a   :  { %923 = vmatpush.bf16.msrb.mxu2 %v1811_v1 }
 0x26b   :  { %v501_v56 = vmul.f32 1.442695, %v500_v55 }
 0x26d   :  { %1880 = vpow2.f32 %v501_v56 }
 0x273   :  { %v1881_v57 = vpop.eup %1880 }
 0x274   :  { %v503_v58 = vsel %vm494_vm3, %v1881_v57, 0.0 }
 0x275   :  { %v504_v59 = vsel %vm496_vm4, %v503_v58, 0.0  ;;  %v809_v14 = vpop.f32.mrf.mxu1 }
 0x276   :  { %505 = vadd.xlane.f32.xlu2 %v504_v59  ;;  %v810_v24 = vadd.f32 %v809_v14, %v790_v21 }
 0x27d   :  { %v811_v15 = vpop.f32.mrf.mxu1 }
 0x285   :  { %v903_v16 = vpop.f32.mrf.mxu1 }
 0x286   :  { %v904_v40 = vadd.f32 %v903_v16, %v887_v33 }
 0x28d   :  { %v905_v18 = vpop.f32.mrf.mxu1 }
 0x2ac   :  { %v728_v5 = vpop.f32.mrf.mxu3 }
 0x2ad   :  { %v729_v6 = vadd.f32 %v1645_v38, %v728_v5 }
 0x2af   :  { %v732_v7 = vmax.f32 %v729_v6, 0.0 }
 0x2b1   :  { %v733_v8 = vpack.c.bf16 %v732_v7, %v732_v7 }
 0x2b3   :  { %1655 = vmatmul.msk.bf16.vlgmr.msra.gmra.mxu0 %vm196_vm0, %v733_v8  ;;  %1668 = vmatmul.msk.bf16.vlgmr.msra.gmra.mxu2 %vm196_vm0, %v733_v8 }
 0x2b4   :  { %v730_v9 = vpop.f32.mrf.mxu3 }
 0x2bc   :  { %v856_v17 = vpop.f32.mrf.mxu3 }
 0x2bd   :  { %v857_v48 = vadd.f32 %v856_v17, %v840_v43 }
 0x2c3   :  { %1678 = vmatmul.msk.bf16.vlgmr.msrb.gmra.mxu0 %vm196_vm0, %v733_v8  ;;  %1688 = vmatmul.msk.bf16.vlgmr.msrb.gmra.mxu2 %vm196_vm0, %v733_v8 }
 0x2c4   :  { %v858_v19 = vpop.f32.mrf.mxu3 }
 0x2e9   :  { %v506_v10 = vpop.xlane.xlu2 %505 }
 0x2ea   :  { %1882 = vlog2.f32 %v506_v10 }
 0x2f0   :  { %v1883_v11 = vpop.eup %1882 }
 0x2f1   :  { %v508_v12 = vmul.f32 0.6931472, %v1883_v11 }
 0x2f3   :  { %v509_v13 = vsub.f32 %v500_v55, %v508_v12  ;;  %v1815_v12 = vld [vmem:[#allocation6 + $0x48] sm:$0xff] }
 0x2f4   :  { %1097 = vmatpush.bf16.msra.mxu2 %v1815_v12 }
 0x2f5   :  { %510 = vst [vmem:[%s2457_s12] sm:$0x1] %v509_v13  ;;  %v1814_v13 = vld [vmem:[#allocation7 + $0x48] sm:$0xff] }
 0x2f6   :  { %1075 = vmatpush.bf16.msra.mxu1 %v1814_v13 }
 0x330   :  { %v757_v22 = vpop.f32.mrf.mxu0 }
 0x331   :  { %v758_v23 = vadd.f32 %v757_v22, %v738_v20  ;;  %v1048_v20 = vstv %s1047_s3 }
 0x332   :  { %vm1049_vm9 = vcmp.eq.s32.totalorder %v2315_v35, %v1048_v20 }
 0x333   :  { %v2368_v25 = vsel %vm761_vm14, %v758_v23, -1e+30  ;;  %v1704_v21 = vsel %vm1049_vm9, 1.0, %v2187_v37 }
 0x334   :  { %v763_v26 = vsel %vm496_vm4, %v2368_v25, -inf  ;;  %v2380_v22 = vadd.f32 %v1704_v21, %v2348_v62  ;;  %v1691_v62 = vld [vmem:[%s2454_s9 + $0x2] sm:$0x1] }
 0x335   :  { %764 = vmax.xlane.f32.xlu0 %v763_v26  ;;  %v1818_v26 = vld [vmem:[#allocation7 + $0x58] sm:$0xff] }
 0x336   :  { %v831_v27 = vpop.f32.mrf.mxu2  ;;  %v1053_v23 = vpack.c.bf16 %v2380_v22, %v2380_v22  ;;  %1169 = vmatpush.bf16.msrb.mxu1 %v1818_v26 }
 0x337   :  { %v835_v28 = vadd.f32 %v831_v27, %v810_v24  ;;  %v1813_v24 = vld [vmem:[#allocation15 + $0x10] sm:$0xff]  ;;  %v1816_v27 = vld [vmem:[#allocation7 + $0x50] sm:$0xff] }
 0x338   :  { %v759_v29 = vpop.f32.mrf.mxu0  ;;  %1709 = vmatmul.msk.bf16.vlgmr.msra.gmra.mxu1 %vm196_vm0, %v1053_v23  ;;  %1023 = vmatpush.bf16.msra.mxu0 %v1813_v24 }
 0x339   :  { %v1690_v30 = vmul.f32 -1.442695, %v835_v28  ;;  %v1817_v28 = vld [vmem:[#allocation6 + $0x50] sm:$0xff]  ;;  %1122 = vmatpush.bf16.msra.mxu3 %v1816_v27 }
 0x33b   :  { %1884 = vpow2.f32 %v1690_v30 }
 0x33c   :  { %1144 = vmatpush.bf16.msrb.mxu0 %v1817_v28 }
 0x33e   :  { %v833_v31 = vpop.f32.mrf.mxu2 }
 0x340   :  { %v878_v34 = vpop.f32.mrf.mxu0 }
 0x341   :  { %v1885_v36 = vpop.eup %1884  ;;  %v882_v51 = vadd.f32 %v878_v34, %v857_v48  ;;  %v1058_v48 = vld [vmem:[#allocation9 + $0x9] sm:$0x1] }
 0x342   :  { %v952_v39 = vadd.f32 1.0, %v1885_v36 }
 0x344   :  { %1886 = vrcp.f32 %v952_v39  ;;  %v964_v55 = vand.u32 2147483648, %v952_v39  ;;  %vm958_vm1 = vweird.f32 %v952_v39  ;;  %v962_v56 = vand.u32 2147483647, %v952_v39 }
 0x346   :  { %v925_v41 = vpop.f32.mrf.mxu2  ;;  %v965_v59 = vor.u32 1.1754944e-38, %v964_v55  ;;  %vm963_vm3 = vcmp.eq.f32.partialorder %v962_v56, 8.507059e+37 }
 0x347   :  { %v929_v42 = vadd.f32 %v925_v41, %v904_v40 }
 0x348   :  { %v880_v44 = vpop.f32.mrf.mxu0  ;;  %1729 = vmatmul.msk.bf16.vlgmr.msrb.gmra.mxu1 %vm196_vm0, %v1053_v23 }
 0x349   :  { %v1689_v45 = vmul.f32 -1.442695, %v929_v42 }
 0x34a   :  { %v1887_v46 = vpop.eup %1886 }
 0x34b   :  { %v954_v47 = vmul.f32 %v1887_v46, %v952_v39  ;;  %1888 = vpow2.f32 %v1689_v45  ;;  %vm959_vm15 = vweird.f32 %v1887_v46 }
 0x34c   :  { %vm960_vm2 = vmor %vm958_vm1, %vm959_vm15  ;;  %1890 = vtanh.f32 %v882_v51 }
 0x34d   :  { %v955_v49 = vsub.f32 1.0, %v954_v47  ;;  %v1006_v47 = vld [vmem:[#allocation16 + $0x2] sm:$0x1] }
 0x34e   :  { %v927_v50 = vpop.f32.mrf.mxu2 }
 0x34f   :  { %v956_v52 = vmul.f32 %v1887_v46, %v955_v49 }
 0x351   :  { %v1889_v53 = vpop.eup %1888  ;;  %v957_v54 = vadd.f32 %v1887_v46, %v956_v52 }
 0x352   :  { %v933_v57 = vadd.f32 1.0, %v1889_v53  ;;  %v1891_v61 = vpop.eup %1890 }
 0x353   :  { %v961_v58 = vsel %vm960_vm2, %v1887_v46, %v957_v54 }
 0x354   :  { %1892 = vrcp.f32 %v933_v57  ;;  %v966_v60 = vsel %vm963_vm3, %v965_v59, %v961_v58  ;;  %v945_v3 = vand.u32 2147483648, %v933_v57  ;;  %v943_v38 = vand.u32 2147483647, %v933_v57  ;;  %v1820_v59 = vld [vmem:[#allocation13 + $0x18] sm:$0xff] }
 0x355   :  { %v969_v0 = vmul.f32 %v1891_v61, %v966_v60  ;;  %vm939_vm6 = vweird.f32 %v933_v57  ;;  %v1155_v60 = vld [vmem:[#allocation9 + $0xb] sm:$0x1] }
 0x356   :  { %v946_v6 = vor.u32 1.1754944e-38, %v945_v3  ;;  %vm944_vm8 = vcmp.eq.f32.partialorder %v943_v38, 8.507059e+37 }
 0x357   :  { %1894 = vtanh.f32 %v969_v0 }
 0x35a   :  { %v1893_v63 = vpop.eup %1892 }
 0x35b   :  { %v935_v1 = vmul.f32 %v1893_v63, %v933_v57  ;;  %vm940_vm5 = vweird.f32 %v1893_v63 }
 0x35c   :  { %vm941_vm7 = vmor %vm939_vm6, %vm940_vm5 }
 0x35d   :  { %v936_v2 = vsub.f32 1.0, %v935_v1  ;;  %v1895_v8 = vpop.eup %1894 }
 0x35f   :  { %v937_v4 = vmul.f32 %v1893_v63, %v936_v2 }
 0x361   :  { %v938_v5 = vadd.f32 %v1893_v63, %v937_v4  ;;  %v1108_v4 = vld [vmem:[#allocation9 + $0xa] sm:$0x1] }
 0x363   :  { %v942_v7 = vsel %vm941_vm7, %v1893_v63, %v938_v5 }
 0x364   :  { %v947_v9 = vsel %vm944_vm8, %v946_v6, %v942_v7 }
 0x365   :  { %v971_v10 = vmul.f32 %v1895_v8, %v947_v9 }
 0x367   :  { %v972_v11 = vpack.c.bf16 %v971_v10, %v971_v10 }
 0x369   :  { %1696 = vmatmul.msk.bf16.vlgmr.msrb.gmra.mxu3 %vm196_vm0, %v972_v11 }
 0x36a   :  { %1262 = vmatpush.bf16.msrb.mxu3 %v1820_v59 }
 0x379   :  { %1719 = vmatmul.msk.bf16.vlgmr.msra.gmra.mxu3 %vm196_vm0, %v1053_v23 }
 0x3a8   :  { %v765_v14 = vpop.xlane.xlu0 %764 }
 0x3a9   :  { %v766_v15 = vsub.f32 %v2368_v25, %v765_v14  ;;  %v1819_v25 = vld [vmem:[#allocation6 + $0x58] sm:$0xff] }
 0x3aa   :  { %1191 = vmatpush.bf16.msrb.mxu2 %v1819_v25 }
 0x3ab   :  { %v767_v16 = vmul.f32 1.442695, %v766_v15 }
 0x3ad   :  { %1896 = vpow2.f32 %v767_v16 }
 0x3b3   :  { %v1897_v17 = vpop.eup %1896 }
 0x3b4   :  { %v769_v18 = vsel %vm761_vm14, %v1897_v17, 0.0 }
 0x3b5   :  { %v770_v19 = vsel %vm496_vm4, %v769_v18, 0.0  ;;  %v1077_v41 = vpop.f32.mrf.mxu1 }
 0x3b6   :  { %771 = vadd.xlane.f32.xlu2 %v770_v19  ;;  %v1078_v51 = vadd.f32 %v1077_v41, %v1058_v48  ;;  %v1822_v48 = vld [vmem:[#allocation7 + $0x60] sm:$0xff] }
 0x3b7   :  { %1342 = vmatpush.bf16.msra.mxu1 %v1822_v48 }
 0x3bd   :  { %v1079_v42 = vpop.f32.mrf.mxu1 }
 0x3c5   :  { %v1171_v43 = vpop.f32.mrf.mxu1 }
 0x3c6   :  { %v1172_v1 = vadd.f32 %v1171_v43, %v1155_v60 }
 0x3cd   :  { %v1173_v45 = vpop.f32.mrf.mxu1 }
 0x3ec   :  { %v996_v29 = vpop.f32.mrf.mxu3 }
 0x3ed   :  { %v997_v30 = vadd.f32 %v1691_v62, %v996_v29 }
 0x3ef   :  { %v1000_v31 = vmax.f32 %v997_v30, 0.0 }
 0x3f1   :  { %v1001_v32 = vpack.c.bf16 %v1000_v31, %v1000_v31 }
 0x3f3   :  { %1701 = vmatmul.msk.bf16.vlgmr.msra.gmra.mxu0 %vm196_vm0, %v1001_v32  ;;  %1714 = vmatmul.msk.bf16.vlgmr.msra.gmra.mxu2 %vm196_vm0, %v1001_v32 }
 0x3f4   :  { %v998_v33 = vpop.f32.mrf.mxu3 }
 0x3fc   :  { %v1124_v44 = vpop.f32.mrf.mxu3 }
 0x3fd   :  { %v1125_v8 = vadd.f32 %v1124_v44, %v1108_v4 }
 0x403   :  { %1724 = vmatmul.msk.bf16.vlgmr.msrb.gmra.mxu0 %vm196_vm0, %v1001_v32  ;;  %1734 = vmatmul.msk.bf16.vlgmr.msrb.gmra.mxu2 %vm196_vm0, %v1001_v32 }
 0x404   :  { %v1126_v46 = vpop.f32.mrf.mxu3 }
 0x405   :  { %v1823_v46 = vld [vmem:[#allocation6 + $0x60] sm:$0xff] }
 0x406   :  { %1364 = vmatpush.bf16.msra.mxu2 %v1823_v46 }
 0x429   :  { %v772_v34 = vpop.xlane.xlu2 %771 }
 0x42a   :  { %1898 = vlog2.f32 %v772_v34 }
 0x430   :  { %v1899_v36 = vpop.eup %1898 }
 0x431   :  { %v774_v39 = vmul.f32 0.6931472, %v1899_v36 }
 0x433   :  { %v775_v40 = vsub.f32 %v766_v15, %v774_v39  ;;  %v1821_v39 = vld [vmem:[#allocation15 + $0x18] sm:$0xff] }
 0x434   :  { %1291 = vmatpush.bf16.msra.mxu0 %v1821_v39 }
 0x435   :  { %1656 = vst [vmem:[%s2457_s12 + $0x1] sm:$0x1] %v775_v40 }
 0x470   :  { %v1025_v49 = vpop.f32.mrf.mxu0 }
 0x471   :  { %v1026_v50 = vadd.f32 %v1025_v49, %v1006_v47  ;;  %v1315_v47 = vstv %s1314_s25 }
 0x472   :  { %vm1316_vm6 = vcmp.eq.s32.totalorder %v2315_v35, %v1315_v47 }
 0x473   :  { %v2400_v52 = vsel %vm1029_vm10, %v1026_v50, -1e+30  ;;  %v1750_v49 = vsel %vm1316_vm6, 1.0, %v2187_v37  ;;  %v1737_v37 = vld [vmem:[%s2454_s9 + $0x3] sm:$0x1] }
 0x474   :  { %v1031_v53 = vsel %vm496_vm4, %v2400_v52, -inf  ;;  %v1319_v50 = vadd.f32 %v1750_v49, %v2380_v22 }
 0x475   :  { %1032 = vmax.xlane.f32.xlu1 %v1031_v53  ;;  %v1827_v53 = vld [vmem:[#allocation6 + $0x70] sm:$0xff] }
 0x476   :  { %v1099_v54 = vpop.f32.mrf.mxu2  ;;  %1458 = vmatpush.bf16.msrb.mxu2 %v1827_v53 }
 0x477   :  { %v1103_v55 = vadd.f32 %v1099_v54, %v1078_v51  ;;  %v1824_v51 = vld [vmem:[#allocation7 + $0x68] sm:$0xff]  ;;  %v1320_v54 = vpack.c.bf16 %v1319_v50, %v1319_v50 }
 0x478   :  { %v1027_v56 = vpop.f32.mrf.mxu0  ;;  %1389 = vmatpush.bf16.msra.mxu3 %v1824_v51 }
 0x479   :  { %v1736_v57 = vmul.f32 -1.442695, %v1103_v55  ;;  %1755 = vmatmul.msk.bf16.vlgmr.msra.gmra.mxu1 %vm196_vm0, %v1320_v54  ;;  %v1826_v55 = vld [vmem:[#allocation7 + $0x70] sm:$0xff] }
 0x47a   :  { %1436 = vmatpush.bf16.msrb.mxu1 %v1826_v55 }
 0x47b   :  { %1900 = vpow2.f32 %v1736_v57 }
 0x47e   :  { %v1101_v58 = vpop.f32.mrf.mxu2 }
 0x480   :  { %v1146_v61 = vpop.f32.mrf.mxu0 }
 0x481   :  { %v1901_v63 = vpop.eup %1900  ;;  %v1150_v11 = vadd.f32 %v1146_v61, %v1125_v8  ;;  %v1325_v8 = vld [vmem:[#allocation9 + $0xc] sm:$0x1] }
 0x482   :  { %v1220_v0 = vadd.f32 1.0, %v1901_v63 }
 0x484   :  { %1902 = vrcp.f32 %v1220_v0  ;;  %v1232_v15 = vand.u32 2147483648, %v1220_v0  ;;  %vm1226_vm12 = vweird.f32 %v1220_v0  ;;  %v1230_v16 = vand.u32 2147483647, %v1220_v0 }
 0x486   :  { %v1193_v2 = vpop.f32.mrf.mxu2  ;;  %v1233_v19 = vor.u32 1.1754944e-38, %v1232_v15  ;;  %vm1231_vm15 = vcmp.eq.f32.partialorder %v1230_v16, 8.507059e+37 }
 0x487   :  { %v1197_v3 = vadd.f32 %v1193_v2, %v1172_v1 }
 0x488   :  { %v1148_v38 = vpop.f32.mrf.mxu0 }
 0x489   :  { %v1735_v5 = vmul.f32 -1.442695, %v1197_v3  ;;  %1775 = vmatmul.msk.bf16.vlgmr.msrb.gmra.mxu1 %vm196_vm0, %v1320_v54 }
 0x48a   :  { %v1903_v6 = vpop.eup %1902 }
 0x48b   :  { %v1222_v7 = vmul.f32 %v1903_v6, %v1220_v0  ;;  %1904 = vpow2.f32 %v1735_v5  ;;  %vm1227_vm11 = vweird.f32 %v1903_v6 }
 0x48c   :  { %vm1228_vm13 = vmor %vm1226_vm12, %vm1227_vm11  ;;  %1906 = vtanh.f32 %v1150_v11 }
 0x48d   :  { %v1223_v9 = vsub.f32 1.0, %v1222_v7 }
 0x48e   :  { %v1195_v10 = vpop.f32.mrf.mxu2 }
 0x48f   :  { %v1224_v12 = vmul.f32 %v1903_v6, %v1223_v9 }
 0x491   :  { %v1905_v13 = vpop.eup %1904  ;;  %v1225_v14 = vadd.f32 %v1903_v6, %v1224_v12 }
 0x492   :  { %v1201_v17 = vadd.f32 1.0, %v1905_v13  ;;  %v1907_v21 = vpop.eup %1906 }
 0x493   :  { %v1229_v18 = vsel %vm1228_vm13, %v1903_v6, %v1225_v14  ;;  %v1274_v6 = vld [vmem:[#allocation16 + $0x3] sm:$0x1] }
 0x494   :  { %1908 = vrcp.f32 %v1201_v17  ;;  %v1234_v20 = vsel %vm1231_vm15, %v1233_v19, %v1229_v18  ;;  %v1213_v27 = vand.u32 2147483648, %v1201_v17  ;;  %v1211_v62 = vand.u32 2147483647, %v1201_v17  ;;  %v1828_v18 = vld [vmem:[#allocation13 + $0x20] sm:$0xff] }
 0x495   :  { %v1237_v24 = vmul.f32 %v1907_v21, %v1234_v20  ;;  %vm1207_vm2 = vweird.f32 %v1201_v17  ;;  %v1422_v20 = vld [vmem:[#allocation9 + $0xe] sm:$0x1] }
 0x496   :  { %v1214_v30 = vor.u32 1.1754944e-38, %v1213_v27  ;;  %vm1212_vm5 = vcmp.eq.f32.partialorder %v1211_v62, 8.507059e+37  ;;  %v1375_v27 = vld [vmem:[#allocation9 + $0xd] sm:$0x1] }
 0x497   :  { %1910 = vtanh.f32 %v1237_v24 }
 0x49a   :  { %v1909_v23 = vpop.eup %1908 }
 0x49b   :  { %v1203_v25 = vmul.f32 %v1909_v23, %v1201_v17  ;;  %vm1208_vm1 = vweird.f32 %v1909_v23 }
 0x49c   :  { %vm1209_vm3 = vmor %vm1207_vm2, %vm1208_vm1 }
 0x49d   :  { %v1204_v26 = vsub.f32 1.0, %v1203_v25  ;;  %v1911_v32 = vpop.eup %1910 }
 0x49f   :  { %v1205_v28 = vmul.f32 %v1909_v23, %v1204_v26 }
 0x4a1   :  { %v1206_v29 = vadd.f32 %v1909_v23, %v1205_v28 }
 0x4a3   :  { %v1210_v31 = vsel %vm1209_vm3, %v1909_v23, %v1206_v29 }
 0x4a4   :  { %v1215_v33 = vsel %vm1212_vm5, %v1214_v30, %v1210_v31 }
 0x4a5   :  { %v1239_v34 = vmul.f32 %v1911_v32, %v1215_v33 }
 0x4a7   :  { %v1240_v36 = vpack.c.bf16 %v1239_v34, %v1239_v34 }
 0x4a9   :  { %1742 = vmatmul.msk.bf16.vlgmr.msrb.gmra.mxu3 %vm196_vm0, %v1240_v36 }
 0x4aa   :  { %1529 = vmatpush.bf16.msrb.mxu3 %v1828_v18 }
 0x4b9   :  { %1765 = vmatmul.msk.bf16.vlgmr.msra.gmra.mxu3 %vm196_vm0, %v1320_v54 }
 0x4e8   :  { %v1033_v40 = vpop.xlane.xlu1 %1032 }
 0x4e9   :  { %v1034_v41 = vsub.f32 %v2400_v52, %v1033_v40  ;;  %v1825_v52 = vld [vmem:[#allocation6 + $0x68] sm:$0xff] }
 0x4ea   :  { %1411 = vmatpush.bf16.msrb.mxu0 %v1825_v52 }
 0x4eb   :  { %v1035_v42 = vmul.f32 1.442695, %v1034_v41 }
 0x4ed   :  { %1912 = vpow2.f32 %v1035_v42 }
 0x4f3   :  { %v1913_v43 = vpop.eup %1912 }
 0x4f4   :  { %v1037_v44 = vsel %vm1029_vm10, %v1913_v43, 0.0 }
 0x4f5   :  { %v1038_v45 = vsel %vm496_vm4, %v1037_v44, 0.0 }
 0x4f6   :  { %1039 = vadd.xlane.f32.xlu0 %v1038_v45  ;;  %v1344_v1 = vpop.f32.mrf.mxu1 }
 0x4f7   :  { %v1345_v10 = vadd.f32 %v1344_v1, %v1325_v8 }
 0x4fe   :  { %v1346_v2 = vpop.f32.mrf.mxu1 }
 0x506   :  { %v1438_v4 = vpop.f32.mrf.mxu1 }
 0x507   :  { %v1439_v24 = vadd.f32 %v1438_v4, %v1422_v20 }
 0x50e   :  { %v1440_v5 = vpop.f32.mrf.mxu1 }
 0x52c   :  { %v1264_v22 = vpop.f32.mrf.mxu3 }
 0x52d   :  { %v1265_v56 = vadd.f32 %v1737_v37, %v1264_v22 }
 0x52f   :  { %v1268_v57 = vmax.f32 %v1265_v56, 0.0 }
 0x531   :  { %v1269_v58 = vpack.c.bf16 %v1268_v57, %v1268_v57 }
 0x533   :  { %1747 = vmatmul.msk.bf16.vlgmr.msra.gmra.mxu0 %vm196_vm0, %v1269_v58  ;;  %1760 = vmatmul.msk.bf16.vlgmr.msra.gmra.mxu2 %vm196_vm0, %v1269_v58 }
 0x534   :  { %v1266_v59 = vpop.f32.mrf.mxu3 }
 0x53c   :  { %v1391_v3 = vpop.f32.mrf.mxu3 }
 0x53d   :  { %v1392_v31 = vadd.f32 %v1391_v3, %v1375_v27  ;;  %v1783_v3 = vld [vmem:[%s2454_s9 + $0x4] sm:$0x1] }
 0x543   :  { %1770 = vmatmul.msk.bf16.vlgmr.msrb.gmra.mxu0 %vm196_vm0, %v1269_v58  ;;  %1780 = vmatmul.msk.bf16.vlgmr.msrb.gmra.mxu2 %vm196_vm0, %v1269_v58 }
 0x544   :  { %v1393_v38 = vpop.f32.mrf.mxu3 }
 0x569   :  { %v1040_v60 = vpop.xlane.xlu0 %1039 }
 0x56a   :  { %1914 = vlog2.f32 %v1040_v60 }
 0x570   :  { %v1915_v61 = vpop.eup %1914 }
 0x571   :  { %v1042_v63 = vmul.f32 0.6931472, %v1915_v61 }
 0x573   :  { %v1043_v0 = vsub.f32 %v1034_v41, %v1042_v63 }
 0x575   :  { %1702 = vst [vmem:[%s2457_s12 + $0x2] sm:$0x1] %v1043_v0 }
 0x5b0   :  { %v1293_v7 = vpop.f32.mrf.mxu0 }
 0x5b1   :  { %v1294_v9 = vadd.f32 %v1293_v7, %v1274_v6 }
 0x5b3   :  { %v2427_v11 = vsel %vm761_vm14, %v1294_v9, -1e+30 }
 0x5b4   :  { %v1298_v12 = vsel %vm496_vm4, %v2427_v11, -inf }
 0x5b5   :  { %1299 = vmax.xlane.f32.xlu1 %v1298_v12 }
 0x5b6   :  { %v1366_v13 = vpop.f32.mrf.mxu2 }
 0x5b7   :  { %v1370_v14 = vadd.f32 %v1366_v13, %v1345_v10 }
 0x5b8   :  { %v1295_v15 = vpop.f32.mrf.mxu0 }
 0x5b9   :  { %v1782_v16 = vmul.f32 -1.442695, %v1370_v14 }
 0x5bb   :  { %1916 = vpow2.f32 %v1782_v16 }
 0x5be   :  { %v1368_v17 = vpop.f32.mrf.mxu2 }
 0x5c0   :  { %v1413_v19 = vpop.f32.mrf.mxu0 }
 0x5c1   :  { %v1917_v21 = vpop.eup %1916  ;;  %v1417_v34 = vadd.f32 %v1413_v19, %v1392_v31 }
 0x5c2   :  { %v1487_v23 = vadd.f32 1.0, %v1917_v21 }
 0x5c4   :  { %1918 = vrcp.f32 %v1487_v23  ;;  %v1499_v41 = vand.u32 2147483648, %v1487_v23  ;;  %vm1493_vm8 = vweird.f32 %v1487_v23  ;;  %v1497_v42 = vand.u32 2147483647, %v1487_v23 }
 0x5c6   :  { %v1460_v25 = vpop.f32.mrf.mxu2  ;;  %v1500_v45 = vor.u32 1.1754944e-38, %v1499_v41  ;;  %vm1498_vm10 = vcmp.eq.f32.partialorder %v1497_v42, 8.507059e+37 }
 0x5c7   :  { %v1464_v26 = vadd.f32 %v1460_v25, %v1439_v24 }
 0x5c8   :  { %v1415_v28 = vpop.f32.mrf.mxu0 }
 0x5c9   :  { %v1781_v62 = vmul.f32 -1.442695, %v1464_v26 }
 0x5ca   :  { %v1919_v29 = vpop.eup %1918 }
 0x5cb   :  { %v1489_v30 = vmul.f32 %v1919_v29, %v1487_v23  ;;  %1920 = vpow2.f32 %v1781_v62  ;;  %vm1494_vm7 = vweird.f32 %v1919_v29 }
 0x5cc   :  { %vm1495_vm9 = vmor %vm1493_vm8, %vm1494_vm7  ;;  %1922 = vtanh.f32 %v1417_v34 }
 0x5cd   :  { %v1490_v32 = vsub.f32 1.0, %v1489_v30 }
 0x5ce   :  { %v1462_v33 = vpop.f32.mrf.mxu2 }
 0x5cf   :  { %v1491_v36 = vmul.f32 %v1919_v29, %v1490_v32 }
 0x5d1   :  { %v1921_v39 = vpop.eup %1920  ;;  %v1492_v40 = vadd.f32 %v1919_v29, %v1491_v36 }
 0x5d2   :  { %v1468_v43 = vadd.f32 1.0, %v1921_v39  ;;  %v1923_v47 = vpop.eup %1922 }
 0x5d3   :  { %v1496_v44 = vsel %vm1495_vm9, %v1919_v29, %v1492_v40 }
 0x5d4   :  { %1924 = vrcp.f32 %v1468_v43  ;;  %v1501_v46 = vsel %vm1498_vm10, %v1500_v45, %v1496_v44  ;;  %v1480_v52 = vand.u32 2147483648, %v1468_v43  ;;  %v1478_v54 = vand.u32 2147483647, %v1468_v43 }
 0x5d5   :  { %v1504_v49 = vmul.f32 %v1923_v47, %v1501_v46  ;;  %vm1474_vm12 = vweird.f32 %v1468_v43 }
 0x5d6   :  { %v1481_v37 = vor.u32 1.1754944e-38, %v1480_v52  ;;  %vm1479_vm15 = vcmp.eq.f32.partialorder %v1478_v54, 8.507059e+37 }
 0x5d7   :  { %1926 = vtanh.f32 %v1504_v49 }
 0x5da   :  { %v1925_v48 = vpop.eup %1924 }
 0x5db   :  { %v1470_v50 = vmul.f32 %v1925_v48, %v1468_v43  ;;  %vm1475_vm11 = vweird.f32 %v1925_v48 }
 0x5dc   :  { %vm1476_vm13 = vmor %vm1474_vm12, %vm1475_vm11 }
 0x5dd   :  { %v1471_v51 = vsub.f32 1.0, %v1470_v50  ;;  %v1927_v56 = vpop.eup %1926 }
 0x5df   :  { %v1472_v53 = vmul.f32 %v1925_v48, %v1471_v51 }
 0x5e1   :  { %v1473_v55 = vadd.f32 %v1925_v48, %v1472_v53 }
 0x5e3   :  { %v1477_v22 = vsel %vm1476_vm13, %v1925_v48, %v1473_v55 }
 0x5e4   :  { %v1482_v57 = vsel %vm1479_vm15, %v1481_v37, %v1477_v22 }
 0x5e5   :  { %v1506_v58 = vmul.f32 %v1927_v56, %v1482_v57 }
 0x5e7   :  { %v1507_v59 = vpack.c.bf16 %v1506_v58, %v1506_v58 }
 0x5e9   :  { %1788 = vmatmul.msk.bf16.vlgmr.msrb.gmra.mxu3 %vm196_vm0, %v1507_v59  ;;  %vm1535_vm0 = vcmask 122880  }
 0x628   :  { %v1300_v60 = vpop.xlane.xlu1 %1299 }
 0x629   :  { %v1301_v61 = vsub.f32 %v2427_v11, %v1300_v60 }
 0x62b   :  { %v1302_v63 = vmul.f32 1.442695, %v1301_v61 }
 0x62d   :  { %1928 = vpow2.f32 %v1302_v63 }
 0x633   :  { %v1929_v0 = vpop.eup %1928 }
 0x634   :  { %v1304_v1 = vsel %vm761_vm14, %v1929_v0, 0.0 }
 0x635   :  { %v1305_v2 = vsel %vm496_vm4, %v1304_v1, 0.0 }
 0x636   :  { %1306 = vadd.xlane.f32.xlu1 %v1305_v2 }
 0x66c   :  { %v1531_v4 = vpop.f32.mrf.mxu3 }
 0x66d   :  { %v1532_v38 = vadd.f32 %v1783_v3, %v1531_v4 }
 0x66f   :  { %1536 = vst.msk [vmem:[#allocation18] sm:$0x1] %vm1535_vm0, %v1532_v38 }
 0x670   :  { %1549 = dma.vmem_to_hbm [thread:$0]  %s1545_s10, 16, %s1547_s16, [#allocation4]  }
 0x674   :  { %v1533_v35 = vpop.f32.mrf.mxu3 }
 0x6a9   :  { %v1307_v5 = vpop.xlane.xlu1 %1306 }
 0x6aa   :  { %1930 = vlog2.f32 %v1307_v5 }
 0x6b0   :  { %v1931_v6 = vpop.eup %1930 }
 0x6b1   :  { %v1309_v7 = vmul.f32 0.6931472, %v1931_v6 }
 0x6b3   :  { %v1310_v8 = vsub.f32 %v1301_v61, %v1309_v7 }
 0x6b5   :  { %1748 = vst [vmem:[%s2457_s12 + $0x3] sm:$0x1] %v1310_v8 }
 0x6b6   :  { %2172 = dma.done.wait [#allocation4], 16  }
 0x6b7   :  { %2173 = vsyncadd [#allocation4], 4294967280 }
 0x6b8   :  { %1556 = vsyncpa [#allocation3], 1 }
 0x6b9   :  { %1557 = vsyncpa [#allocation8], 1 }
 0x6ba   :  { %1558 = vsyncpa [#allocation11], 1 }
 0x6bb   :  { %1559 = vsyncpa [#allocation14], 1 }
 0x6bc   :  { %1560 = vsyncpa [#allocation17], 1 }
 0x6bd   :  { %1561 = vsyncpa [#allocation4], 1 }
 0x6be   :  { %1562 = vsyncpa [#allocation5], 1 }

</bundles_post_ra>
